<compile_context>
chip_gen: v6e
topology: v6e:2x2x1
jax: 0.10.0
libtpu: 0.0.40
codegen_flags: <defaults>
</compile_context>

<pallas_src>
import functools

import numpy as np

import jax
import jax.numpy as jnp
from jax.experimental import pallas as pl
from jax.experimental.pallas import tpu as pltpu


# --------------------------------------------------------------------------
# Static (trace-time) interpolation matrices — plain numpy, become constants
# --------------------------------------------------------------------------
def _resize_matrix_np(in_size, out_size):
    """PyTorch bilinear align_corners=True interpolation matrix (out, in)."""
    if out_size > 1:
        src = np.arange(out_size, dtype=np.float64) * (in_size - 1) / (out_size - 1)
    else:
        src = np.zeros((out_size,), dtype=np.float64)
    i0 = np.clip(np.floor(src).astype(np.int64), 0, in_size - 1)
    i1 = np.clip(i0 + 1, 0, in_size - 1)
    frac = src - i0
    m = np.zeros((out_size, in_size), dtype=np.float64)
    rows = np.arange(out_size)
    np.add.at(m, (rows, i0), 1.0 - frac)
    np.add.at(m, (rows, i1), frac)
    return m


def _padded_resize_mats(h, w, out_h, out_w):
    """Resize matrix for `zero-pad(1) then bilinear resize`, split into the
    part acting on interior (un-padded) pixels and the border weight sum."""
    hp, wp = h + 2, w + 2
    r = np.kron(_resize_matrix_np(hp, out_h), _resize_matrix_np(wp, out_w))
    rr, cc = np.meshgrid(np.arange(h), np.arange(w), indexing="ij")
    interior = ((rr + 1) * wp + (cc + 1)).reshape(-1)       # flat padded idx
    a = r[:, interior]                                      # (out_h*out_w, h*w)
    c = r.sum(axis=1) - a.sum(axis=1)                       # border weight sum
    return a, c


def _plain_resize_mat(h, w, out_h, out_w):
    return np.kron(_resize_matrix_np(h, out_h), _resize_matrix_np(w, out_w))


# --------------------------------------------------------------------------
# Fused Pallas kernel: whole SegHead for one batch element, VMEM-resident
# --------------------------------------------------------------------------
def _seg_head_kernel(x1_ref, x2_ref, x3_ref,
                     wr_ref, br_ref,
                     w1a_ref, w1b_ref, b1_ref,
                     w2a_ref, w2b_ref, b2_ref,
                     a3t_ref, brd3_ref, a2t_ref, brd2_ref, rot_ref,
                     o_ref):
    bf16 = jnp.bfloat16

    def mm(a, b):
        # bf16 operands -> native MXU rate on all generations, f32 accumulate.
        return jnp.dot(a.astype(bf16), b.astype(bf16),
                       preferred_element_type=jnp.float32)

    # reduce_conv (1x1 conv + ReLU) on x3 interior pixels: (d, P3)
    a3 = jnp.maximum(mm(wr_ref[...], x3_ref[0]) + br_ref[...], 0.0)

    # zero-pad(1) + bilinear resize to x2 grid, folded into one matmul: (d, P2)
    x3r = mm(a3, a3t_ref[...]) + brd3_ref[...]

    # up_conv1 on cat([x2, x3r]) as split-weight dual matmul (+ReLU): (d, P2)
    a2 = jnp.maximum(mm(w1a_ref[...], x2_ref[0]) + mm(w1b_ref[...], x3r)
                     + b1_ref[...], 0.0)

    # zero-pad(1) + bilinear resize to x1 grid: (d, P1)
    x2r = mm(a2, a2t_ref[...]) + brd2_ref[...]

    # up_conv2 on cat([x1, x2r]) (no padding, no ReLU): (n_pad, P1)
    a1 = mm(w2a_ref[...], x1_ref[0]) + mm(w2b_ref[...], x2r) + b2_ref[...]

    # final bilinear resize to x_shape[2:]: (n_pad, Po), lane-dense store
    o_ref[0] = mm(a1, rot_ref[...])


# --------------------------------------------------------------------------
# SegHead forward
# --------------------------------------------------------------------------
def seg_head_forward(params, x1, x2, x3, x_shape):
    """x1/x2/x3: NCHW float32; x_shape: static (N, C, H, W) tuple."""
    n, ch1, h1, w1 = x1.shape
    _, ch2, h2, w2 = x2.shape
    _, ch3, h3, w3 = x3.shape
    out_h, out_w = int(x_shape[2]), int(x_shape[3])
    d_model = params["w_reduce"].shape[1]
    n_classes = params["w_up2"].shape[1]
    n_pad = max(8, -(-n_classes // 8) * 8)             # sublane-aligned classes
    p1, p2, p3, po = h1 * w1, h2 * w2, h3 * w3, out_h * out_w

    # Static interpolation matrices (trace-time numpy -> constants).
    A3, c3 = _padded_resize_mats(h3, w3, h2, w2)       # (p2, p3), (p2,)
    A2, c2 = _padded_resize_mats(h2, w2, h1, w1)       # (p1, p2), (p1,)
    Ro = _plain_resize_mat(h1, w1, out_h, out_w)       # (po, p1)

    bf16, f32 = jnp.bfloat16, jnp.float32
    a3t = jnp.asarray(A3.T, bf16)                      # (p3, p2)
    a2t = jnp.asarray(A2.T, bf16)                      # (p2, p1)
    rot = jnp.asarray(Ro.T, bf16)                      # (p1, po)

    # Parameter prep (in deployment this would be folded at weight-load time).
    wr_t = params["w_reduce"].T.astype(bf16)           # (d, 576)
    w1a_t = params["w_up1"][:ch2].T.astype(bf16)       # (d, 48)
    w1b_t = params["w_up1"][ch2:].T.astype(bf16)       # (d, d)
    w2p = jnp.pad(params["w_up2"], ((0, 0), (0, n_pad - n_classes)))
    w2a_t = w2p[:ch1].T.astype(bf16)                   # (n_pad, 16)
    w2b_t = w2p[ch1:].T.astype(bf16)                   # (n_pad, d)
    br = params["b_reduce"].reshape(d_model, 1).astype(f32)
    b1 = params["b_up1"].reshape(d_model, 1).astype(f32)
    b2 = jnp.pad(params["b_up2"], (0, n_pad - n_classes)).reshape(n_pad, 1).astype(f32)

    # Border pixels of Conv2d(k=1, padding=1) equal relu(bias); their resized
    # contribution is a rank-1 term (kept in f32).
    border3 = jnp.maximum(params["b_reduce"], 0.0)[:, None] * jnp.asarray(c3, f32)[None, :]
    border2 = jnp.maximum(params["b_up1"], 0.0)[:, None] * jnp.asarray(c2, f32)[None, :]

    # Flatten spatial dims — free reshapes, layout stays channel-major (NCHW).
    x1f = x1.reshape(n, ch1, p1).astype(f32)
    x2f = x2.reshape(n, ch2, p2).astype(f32)
    x3f = x3.reshape(n, ch3, p3).astype(f32)

    def _full(shape):
        nd = len(shape)
        return pl.BlockSpec(shape, lambda b, _nd=nd: (0,) * _nd)

    out = pl.pallas_call(
        _seg_head_kernel,
        out_shape=jax.ShapeDtypeStruct((n, n_pad, po), f32),
        grid=(n,),
        in_specs=[
            pl.BlockSpec((1, ch1, p1), lambda b: (b, 0, 0)),
            pl.BlockSpec((1, ch2, p2), lambda b: (b, 0, 0)),
            pl.BlockSpec((1, ch3, p3), lambda b: (b, 0, 0)),
            _full((d_model, ch3)),      # wr_t
            _full((d_model, 1)),        # br
            _full((d_model, ch2)),      # w1a_t
            _full((d_model, d_model)),  # w1b_t
            _full((d_model, 1)),        # b1
            _full((n_pad, ch1)),        # w2a_t
            _full((n_pad, d_model)),    # w2b_t
            _full((n_pad, 1)),          # b2
            _full((p3, p2)),            # a3t
            _full((d_model, p2)),       # border3
            _full((p2, p1)),            # a2t
            _full((d_model, p1)),       # border2
            _full((p1, po)),            # rot
        ],
        out_specs=pl.BlockSpec((1, n_pad, po), lambda b: (b, 0, 0)),
        compiler_params=pltpu.CompilerParams(
            dimension_semantics=("parallel",)),   # both TCs on v7x
    )(x1f, x2f, x3f, wr_t, br, w1a_t, w1b_t, b1, w2a_t, w2b_t, b2,
      a3t, border3, a2t, border2, rot)

    # Drop the padded class channels; reshape is already NCHW.
    return out[:, :n_classes, :].reshape(n, n_classes, out_h, out_w)


# --------------------------------------------------------------------------
# Pure-JAX f32 reference (mirrors the PyTorch module op-by-op)
# --------------------------------------------------------------------------
def _seg_head_reference(params, x1, x2, x3, x_shape):
    hp = jax.lax.Precision.HIGHEST

    def conv1x1(x, w, b, padding, relu):
        if padding:
            x = jnp.pad(x, ((0, 0), (0, 0), (padding, padding), (padding, padding)))
        y = jnp.einsum("nchw,cd->ndhw", x, w, precision=hp) + b[None, :, None, None]
        return jnp.maximum(y, 0.0) if relu else y

    def resize(x, oh, ow):
        _, _, h, w = x.shape
        rh = jnp.asarray(_resize_matrix_np(h, oh), jnp.float32)
        rw = jnp.asarray(_resize_matrix_np(w, ow), jnp.float32)
        y = jnp.einsum("oh,nchw->ncow", rh, x, precision=hp)
        return jnp.einsum("pw,ncow->ncop", rw, y, precision=hp)

    y3 = conv1x1(x3, params["w_reduce"], params["b_reduce"], 1, True)
    y3 = resize(y3, x2.shape[2], x2.shape[3])
    y2 = jnp.concatenate([x2, y3], axis=1)
    y2 = conv1x1(y2, params["w_up1"], params["b_up1"], 1, True)
    y2 = resize(y2, x1.shape[2], x1.shape[3])
    y1 = jnp.concatenate([x1, y2], axis=1)
    y1 = conv1x1(y1, params["w_up2"], params["b_up2"], 0, False)
    return resize(y1, x_shape[2], x_shape[3])


def init_params(key, d_model=128, n_classes=2):
    ks = jax.random.split(key, 6)
    s = 0.02
    return {
        "w_reduce": jax.random.normal(ks[0], (576, d_model), jnp.float32) * s,
        "b_reduce": jax.random.normal(ks[1], (d_model,), jnp.float32) * s,
        "w_up1": jax.random.normal(ks[2], (48 + d_model, d_model), jnp.float32) * s,
        "b_up1": jax.random.normal(ks[3], (d_model,), jnp.float32) * s,
        "w_up2": jax.random.normal(ks[4], (16 + d_model, n_classes), jnp.float32) * s,
        "b_up2": jax.random.normal(ks[5], (n_classes,), jnp.float32) * s,
    }


if __name__ == "__main__":
    key = jax.random.PRNGKey(0)
    kp, k1, k2, k3 = jax.random.split(key, 4)

    d_model, n_classes = 128, 2
    params = init_params(kp, d_model=d_model, n_classes=n_classes)

    # NCHW inputs matching the module's channel contract (16 / 48 / 576).
    batch = 2
    x1 = jax.random.normal(k1, (batch, 16, 16, 16), jnp.float32)
    x2 = jax.random.normal(k2, (batch, 48, 8, 8), jnp.float32)
    x3 = jax.random.normal(k3, (batch, 576, 4, 4), jnp.float32)
    x_shape = (batch, 3, 32, 32)      # only x_shape[2:] is used

    fwd = jax.jit(functools.partial(seg_head_forward, x_shape=x_shape))
    out = jax.block_until_ready(fwd(params, x1, x2, x3))

    assert out.shape == (batch, n_classes, x_shape[2], x_shape[3]), out.shape
    assert out.dtype == jnp.float32
    assert bool(jnp.isfinite(out).all())

    # Correctness vs full-f32 reference (loose tol: kernel uses bf16 operands).
    ref = _seg_head_reference(params, x1, x2, x3, x_shape)
    err = float(jnp.max(jnp.abs(out - ref)))
    assert err < 5e-2, f"max abs error vs reference: {err}"

    print("KERNEL_OK")
</pallas_src>

<mosaic_0001>
module attributes {stable_mosaic.version = 11 : i64} {
  func.func @_seg_head_kernel(%arg0: i32, %arg1: memref<1x16x256xf32, #tpu.memory_space<vmem>>, %arg2: memref<1x48x64xf32, #tpu.memory_space<vmem>>, %arg3: memref<1x576x16xf32, #tpu.memory_space<vmem>>, %arg4: memref<128x576xbf16, #tpu.memory_space<vmem>>, %arg5: memref<128x1xf32, #tpu.memory_space<vmem>>, %arg6: memref<128x48xbf16, #tpu.memory_space<vmem>>, %arg7: memref<128x128xbf16, #tpu.memory_space<vmem>>, %arg8: memref<128x1xf32, #tpu.memory_space<vmem>>, %arg9: memref<8x16xbf16, #tpu.memory_space<vmem>>, %arg10: memref<8x128xbf16, #tpu.memory_space<vmem>>, %arg11: memref<8x1xf32, #tpu.memory_space<vmem>>, %arg12: memref<16x64xbf16, #tpu.memory_space<vmem>>, %arg13: memref<128x64xf32, #tpu.memory_space<vmem>>, %arg14: memref<64x256xbf16, #tpu.memory_space<vmem>>, %arg15: memref<128x256xf32, #tpu.memory_space<vmem>>, %arg16: memref<256x1024xbf16, #tpu.memory_space<vmem>>, %arg17: memref<1x8x1024xf32, #tpu.memory_space<vmem>>) attributes {dimension_semantics = [#tpu.dimension_semantics<parallel>], iteration_bounds = array<i64: 2>, scalar_prefetch = 0 : i64, scratch_operands = 0 : i64, tpu.core_type = #tpu.core_type<tc>, window_params = [{transform_indices = @transform_0, window_bounds = array<i64: 1, 16, 256>}, {transform_indices = @transform_1, window_bounds = array<i64: 1, 48, 64>}, {transform_indices = @transform_2, window_bounds = array<i64: 1, 576, 16>}, {pipeline_mode = #tpu.pipeline_mode<synchronous>, transform_indices = @transform_3, window_bounds = array<i64: 128, 576>}, {pipeline_mode = #tpu.pipeline_mode<synchronous>, transform_indices = @transform_4, window_bounds = array<i64: 128, 1>}, {pipeline_mode = #tpu.pipeline_mode<synchronous>, transform_indices = @transform_5, window_bounds = array<i64: 128, 48>}, {pipeline_mode = #tpu.pipeline_mode<synchronous>, transform_indices = @transform_6, window_bounds = array<i64: 128, 128>}, {pipeline_mode = #tpu.pipeline_mode<synchronous>, transform_indices = @transform_7, window_bounds = array<i64: 128, 1>}, {pipeline_mode = #tpu.pipeline_mode<synchronous>, transform_indices = @transform_8, window_bounds = array<i64: 8, 16>}, {pipeline_mode = #tpu.pipeline_mode<synchronous>, transform_indices = @transform_9, window_bounds = array<i64: 8, 128>}, {pipeline_mode = #tpu.pipeline_mode<synchronous>, transform_indices = @transform_10, window_bounds = array<i64: 8, 1>}, {pipeline_mode = #tpu.pipeline_mode<synchronous>, transform_indices = @transform_11, window_bounds = array<i64: 16, 64>}, {pipeline_mode = #tpu.pipeline_mode<synchronous>, transform_indices = @transform_12, window_bounds = array<i64: 128, 64>}, {pipeline_mode = #tpu.pipeline_mode<synchronous>, transform_indices = @transform_13, window_bounds = array<i64: 64, 256>}, {pipeline_mode = #tpu.pipeline_mode<synchronous>, transform_indices = @transform_14, window_bounds = array<i64: 128, 256>}, {pipeline_mode = #tpu.pipeline_mode<synchronous>, transform_indices = @transform_15, window_bounds = array<i64: 256, 1024>}, {transform_indices = @transform_16, window_bounds = array<i64: 1, 8, 1024>}]} {
    %c0 = arith.constant 0 : index
    %c0_0 = arith.constant 0 : index
    %0 = vector.load %arg4[%c0, %c0_0] : memref<128x576xbf16, #tpu.memory_space<vmem>>, vector<128x576xbf16>
    %c0_1 = arith.constant 0 : index
    %c0_2 = arith.constant 0 : index
    %c0_3 = arith.constant 0 : index
    %1 = vector.load %arg3[%c0_1, %c0_2, %c0_3] : memref<1x576x16xf32, #tpu.memory_space<vmem>>, vector<1x576x16xf32>
    %2 = vector.shape_cast %1 : vector<1x576x16xf32> to vector<576x16xf32>
    %3 = arith.truncf %2 : vector<576x16xf32> to vector<576x16xbf16>
    %cst = arith.constant dense<0.000000e+00> : vector<128x16xf32>
    %4 = tpu.matmul %0, %3, %cst {dimension_numbers = #tpu.dot_dimension_numbers<[1], [0], [0], [1], [0, 0, 1, 1], [], []>} : vector<128x576xbf16>, vector<576x16xbf16>, vector<128x16xf32> -> vector<128x16xf32>
    %c0_4 = arith.constant 0 : index
    %c0_5 = arith.constant 0 : index
    %5 = vector.load %arg5[%c0_4, %c0_5] : memref<128x1xf32, #tpu.memory_space<vmem>>, vector<128x1xf32>
    %6 = vector.broadcast %5 : vector<128x1xf32> to vector<128x16xf32>
    %7 = arith.addf %4, %6 : vector<128x16xf32>
    %cst_6 = arith.constant 0.000000e+00 : f32
    %8 = vector.broadcast %cst_6 : f32 to vector<128x16xf32>
    %9 = arith.maximumf %7, %8 : vector<128x16xf32>
    %c0_7 = arith.constant 0 : index
    %c0_8 = arith.constant 0 : index
    %10 = vector.load %arg12[%c0_7, %c0_8] : memref<16x64xbf16, #tpu.memory_space<vmem>>, vector<16x64xbf16>
    %11 = arith.truncf %9 : vector<128x16xf32> to vector<128x16xbf16>
    %cst_9 = arith.constant dense<0.000000e+00> : vector<128x64xf32>
    %12 = tpu.matmul %11, %10, %cst_9 {dimension_numbers = #tpu.dot_dimension_numbers<[1], [0], [0], [1], [0, 0, 1, 1], [], []>} : vector<128x16xbf16>, vector<16x64xbf16>, vector<128x64xf32> -> vector<128x64xf32>
    %c0_10 = arith.constant 0 : index
    %c0_11 = arith.constant 0 : index
    %13 = vector.load %arg13[%c0_10, %c0_11] : memref<128x64xf32, #tpu.memory_space<vmem>>, vector<128x64xf32>
    %14 = arith.addf %12, %13 : vector<128x64xf32>
    %c0_12 = arith.constant 0 : index
    %c0_13 = arith.constant 0 : index
    %15 = vector.load %arg6[%c0_12, %c0_13] : memref<128x48xbf16, #tpu.memory_space<vmem>>, vector<128x48xbf16>
    %c0_14 = arith.constant 0 : index
    %c0_15 = arith.constant 0 : index
    %c0_16 = arith.constant 0 : index
    %16 = vector.load %arg2[%c0_14, %c0_15, %c0_16] : memref<1x48x64xf32, #tpu.memory_space<vmem>>, vector<1x48x64xf32>
    %17 = vector.shape_cast %16 : vector<1x48x64xf32> to vector<48x64xf32>
    %18 = arith.truncf %17 : vector<48x64xf32> to vector<48x64xbf16>
    %cst_17 = arith.constant dense<0.000000e+00> : vector<128x64xf32>
    %19 = tpu.matmul %15, %18, %cst_17 {dimension_numbers = #tpu.dot_dimension_numbers<[1], [0], [0], [1], [0, 0, 1, 1], [], []>} : vector<128x48xbf16>, vector<48x64xbf16>, vector<128x64xf32> -> vector<128x64xf32>
    %c0_18 = arith.constant 0 : index
    %c0_19 = arith.constant 0 : index
    %20 = vector.load %arg7[%c0_18, %c0_19] : memref<128x128xbf16, #tpu.memory_space<vmem>>, vector<128x128xbf16>
    %21 = arith.truncf %14 : vector<128x64xf32> to vector<128x64xbf16>
    %cst_20 = arith.constant dense<0.000000e+00> : vector<128x64xf32>
    %22 = tpu.matmul %20, %21, %cst_20 {dimension_numbers = #tpu.dot_dimension_numbers<[1], [0], [0], [1], [0, 0, 1, 1], [], []>} : vector<128x128xbf16>, vector<128x64xbf16>, vector<128x64xf32> -> vector<128x64xf32>
    %23 = arith.addf %19, %22 : vector<128x64xf32>
    %c0_21 = arith.constant 0 : index
    %c0_22 = arith.constant 0 : index
    %24 = vector.load %arg8[%c0_21, %c0_22] : memref<128x1xf32, #tpu.memory_space<vmem>>, vector<128x1xf32>
    %25 = vector.broadcast %24 : vector<128x1xf32> to vector<128x64xf32>
    %26 = arith.addf %23, %25 : vector<128x64xf32>
    %cst_23 = arith.constant 0.000000e+00 : f32
    %27 = vector.broadcast %cst_23 : f32 to vector<128x64xf32>
    %28 = arith.maximumf %26, %27 : vector<128x64xf32>
    %c0_24 = arith.constant 0 : index
    %c0_25 = arith.constant 0 : index
    %29 = vector.load %arg14[%c0_24, %c0_25] : memref<64x256xbf16, #tpu.memory_space<vmem>>, vector<64x256xbf16>
    %30 = arith.truncf %28 : vector<128x64xf32> to vector<128x64xbf16>
    %cst_26 = arith.constant dense<0.000000e+00> : vector<128x256xf32>
    %31 = tpu.matmul %30, %29, %cst_26 {dimension_numbers = #tpu.dot_dimension_numbers<[1], [0], [0], [1], [0, 0, 1, 1], [], []>} : vector<128x64xbf16>, vector<64x256xbf16>, vector<128x256xf32> -> vector<128x256xf32>
    %c0_27 = arith.constant 0 : index
    %c0_28 = arith.constant 0 : index
    %32 = vector.load %arg15[%c0_27, %c0_28] : memref<128x256xf32, #tpu.memory_space<vmem>>, vector<128x256xf32>
    %33 = arith.addf %31, %32 : vector<128x256xf32>
    %c0_29 = arith.constant 0 : index
    %c0_30 = arith.constant 0 : index
    %34 = vector.load %arg9[%c0_29, %c0_30] : memref<8x16xbf16, #tpu.memory_space<vmem>>, vector<8x16xbf16>
    %c0_31 = arith.constant 0 : index
    %c0_32 = arith.constant 0 : index
    %c0_33 = arith.constant 0 : index
    %35 = vector.load %arg1[%c0_31, %c0_32, %c0_33] : memref<1x16x256xf32, #tpu.memory_space<vmem>>, vector<1x16x256xf32>
    %36 = vector.shape_cast %35 : vector<1x16x256xf32> to vector<16x256xf32>
    %37 = arith.truncf %36 : vector<16x256xf32> to vector<16x256xbf16>
    %cst_34 = arith.constant dense<0.000000e+00> : vector<8x256xf32>
    %38 = tpu.matmul %34, %37, %cst_34 {dimension_numbers = #tpu.dot_dimension_numbers<[1], [0], [0], [1], [0, 0, 1, 1], [], []>} : vector<8x16xbf16>, vector<16x256xbf16>, vector<8x256xf32> -> vector<8x256xf32>
    %c0_35 = arith.constant 0 : index
    %c0_36 = arith.constant 0 : index
    %39 = vector.load %arg10[%c0_35, %c0_36] : memref<8x128xbf16, #tpu.memory_space<vmem>>, vector<8x128xbf16>
    %40 = arith.truncf %33 : vector<128x256xf32> to vector<128x256xbf16>
    %cst_37 = arith.constant dense<0.000000e+00> : vector<8x256xf32>
    %41 = tpu.matmul %39, %40, %cst_37 {dimension_numbers = #tpu.dot_dimension_numbers<[1], [0], [0], [1], [0, 0, 1, 1], [], []>} : vector<8x128xbf16>, vector<128x256xbf16>, vector<8x256xf32> -> vector<8x256xf32>
    %42 = arith.addf %38, %41 : vector<8x256xf32>
    %c0_38 = arith.constant 0 : index
    %c0_39 = arith.constant 0 : index
    %43 = vector.load %arg11[%c0_38, %c0_39] : memref<8x1xf32, #tpu.memory_space<vmem>>, vector<8x1xf32>
    %44 = vector.broadcast %43 : vector<8x1xf32> to vector<8x256xf32>
    %45 = arith.addf %42, %44 : vector<8x256xf32>
    %c0_40 = arith.constant 0 : index
    %c0_41 = arith.constant 0 : index
    %46 = vector.load %arg16[%c0_40, %c0_41] : memref<256x1024xbf16, #tpu.memory_space<vmem>>, vector<256x1024xbf16>
    %47 = arith.truncf %45 : vector<8x256xf32> to vector<8x256xbf16>
    %cst_42 = arith.constant dense<0.000000e+00> : vector<8x1024xf32>
    %48 = tpu.matmul %47, %46, %cst_42 {dimension_numbers = #tpu.dot_dimension_numbers<[1], [0], [0], [1], [0, 0, 1, 1], [], []>} : vector<8x256xbf16>, vector<256x1024xbf16>, vector<8x1024xf32> -> vector<8x1024xf32>
    %c0_43 = arith.constant 0 : index
    %c0_44 = arith.constant 0 : index
    %c0_45 = arith.constant 0 : index
    %49 = vector.load %arg17[%c0_43, %c0_44, %c0_45] : memref<1x8x1024xf32, #tpu.memory_space<vmem>>, vector<1x8x1024xf32>
    %50 = vector.shape_cast %49 : vector<1x8x1024xf32> to vector<8x1024xf32>
    %51 = vector.shape_cast %48 : vector<8x1024xf32> to vector<1x8x1024xf32>
    tpu.vector_store %arg17[%c0_43, %c0_44, %c0_45], %51 {strides = array<i32>} : memref<1x8x1024xf32, #tpu.memory_space<vmem>>, vector<1x8x1024xf32>,
    return
  }
  func.func @transform_0(%arg0: i32) -> (i32, i32, i32) {
    %c0_i32 = arith.constant 0 : i32
    %c0_i32_0 = arith.constant 0 : i32
    %c0_i32_1 = arith.constant 0 : i32
    return %arg0, %c0_i32, %c0_i32_0 : i32, i32, i32
  }
  func.func @transform_1(%arg0: i32) -> (i32, i32, i32) {
    %c0_i32 = arith.constant 0 : i32
    %c0_i32_0 = arith.constant 0 : i32
    %c0_i32_1 = arith.constant 0 : i32
    return %arg0, %c0_i32, %c0_i32_0 : i32, i32, i32
  }
  func.func @transform_2(%arg0: i32) -> (i32, i32, i32) {
    %c0_i32 = arith.constant 0 : i32
    %c0_i32_0 = arith.constant 0 : i32
    %c0_i32_1 = arith.constant 0 : i32
    return %arg0, %c0_i32, %c0_i32_0 : i32, i32, i32
  }
  func.func @transform_3(%arg0: i32) -> (i32, i32) {
    %c0_i32 = arith.constant 0 : i32
    %c0_i32_0 = arith.constant 0 : i32
    %c0_i32_1 = arith.constant 0 : i32
    return %c0_i32, %c0_i32_0 : i32, i32
  }
  func.func @transform_4(%arg0: i32) -> (i32, i32) {
    %c0_i32 = arith.constant 0 : i32
    %c0_i32_0 = arith.constant 0 : i32
    %c0_i32_1 = arith.constant 0 : i32
    return %c0_i32, %c0_i32_0 : i32, i32
  }
  func.func @transform_5(%arg0: i32) -> (i32, i32) {
    %c0_i32 = arith.constant 0 : i32
    %c0_i32_0 = arith.constant 0 : i32
    %c0_i32_1 = arith.constant 0 : i32
    return %c0_i32, %c0_i32_0 : i32, i32
  }
  func.func @transform_6(%arg0: i32) -> (i32, i32) {
    %c0_i32 = arith.constant 0 : i32
    %c0_i32_0 = arith.constant 0 : i32
    %c0_i32_1 = arith.constant 0 : i32
    return %c0_i32, %c0_i32_0 : i32, i32
  }
  func.func @transform_7(%arg0: i32) -> (i32, i32) {
    %c0_i32 = arith.constant 0 : i32
    %c0_i32_0 = arith.constant 0 : i32
    %c0_i32_1 = arith.constant 0 : i32
    return %c0_i32, %c0_i32_0 : i32, i32
  }
  func.func @transform_8(%arg0: i32) -> (i32, i32) {
    %c0_i32 = arith.constant 0 : i32
    %c0_i32_0 = arith.constant 0 : i32
    %c0_i32_1 = arith.constant 0 : i32
    return %c0_i32, %c0_i32_0 : i32, i32
  }
  func.func @transform_9(%arg0: i32) -> (i32, i32) {
    %c0_i32 = arith.constant 0 : i32
    %c0_i32_0 = arith.constant 0 : i32
    %c0_i32_1 = arith.constant 0 : i32
    return %c0_i32, %c0_i32_0 : i32, i32
  }
  func.func @transform_10(%arg0: i32) -> (i32, i32) {
    %c0_i32 = arith.constant 0 : i32
    %c0_i32_0 = arith.constant 0 : i32
    %c0_i32_1 = arith.constant 0 : i32
    return %c0_i32, %c0_i32_0 : i32, i32
  }
  func.func @transform_11(%arg0: i32) -> (i32, i32) {
    %c0_i32 = arith.constant 0 : i32
    %c0_i32_0 = arith.constant 0 : i32
    %c0_i32_1 = arith.constant 0 : i32
    return %c0_i32, %c0_i32_0 : i32, i32
  }
  func.func @transform_12(%arg0: i32) -> (i32, i32) {
    %c0_i32 = arith.constant 0 : i32
    %c0_i32_0 = arith.constant 0 : i32
    %c0_i32_1 = arith.constant 0 : i32
    return %c0_i32, %c0_i32_0 : i32, i32
  }
  func.func @transform_13(%arg0: i32) -> (i32, i32) {
    %c0_i32 = arith.constant 0 : i32
    %c0_i32_0 = arith.constant 0 : i32
    %c0_i32_1 = arith.constant 0 : i32
    return %c0_i32, %c0_i32_0 : i32, i32
  }
  func.func @transform_14(%arg0: i32) -> (i32, i32) {
    %c0_i32 = arith.constant 0 : i32
    %c0_i32_0 = arith.constant 0 : i32
    %c0_i32_1 = arith.constant 0 : i32
    return %c0_i32, %c0_i32_0 : i32, i32
  }
  func.func @transform_15(%arg0: i32) -> (i32, i32) {
    %c0_i32 = arith.constant 0 : i32
    %c0_i32_0 = arith.constant 0 : i32
    %c0_i32_1 = arith.constant 0 : i32
    return %c0_i32, %c0_i32_0 : i32, i32
  }
  func.func @transform_16(%arg0: i32) -> (i32, i32, i32) {
    %c0_i32 = arith.constant 0 : i32
    %c0_i32_0 = arith.constant 0 : i32
    %c0_i32_1 = arith.constant 0 : i32
    return %arg0, %c0_i32, %c0_i32_0 : i32, i32, i32
  }
}

</mosaic_0001>

<bundles_post_ra>
// kernel: seg_head_forward.1
= control target key start
LH: loop header
LB: loop body
LE: loop exit
PB: predicated region body
PF: predicated region fallthrough
CT: control target
= control target key end

     0   :  { %s4053_s21 = smov 0   ;;  %s5242_s0 = inlined_call_operand.vmem [shape: f32[2,16,256], index: 0, kind: input, shape index: {}]   ;;  %s5243_s1 = inlined_call_operand.vmem [shape: f32[2,48,64], index: 1, kind: input, shape index: {}]   ;;  %s5244_s2 = inlined_call_operand.vmem [shape: f32[2,576,16], index: 2, kind: input, shape index: {}]   ;;  %s5245_s3 = inlined_call_operand.vmem [shape: bf16[128,576], index: 3, kind: input, shape index: {}]   ;;  %s5246_s4 = inlined_call_operand.vmem [shape: f32[128,1], index: 4, kind: input, shape index: {}]   ;;  %s5247_s5 = inlined_call_operand.vmem [shape: bf16[128,48], index: 5, kind: input, shape index: {}]   ;;  %s5248_s6 = inlined_call_operand.vmem [shape: bf16[128,128], index: 6, kind: input, shape index: {}]   ;;  %s5249_s7 = inlined_call_operand.vmem [shape: f32[128,1], index: 7, kind: input, shape index: {}]   ;;  %s5250_s8 = inlined_call_operand.vmem [shape: bf16[8,16], index: 8, kind: input, shape index: {}]   ;;  %s5251_s9 = inlined_call_operand.vmem [shape: bf16[8,128], index: 9, kind: input, shape index: {}]   ;;  %s5252_s10 = inlined_call_operand.vmem [shape: f32[8,1], index: 10, kind: input, shape index: {}]   ;;  %s5253_s11 = inlined_call_operand.vmem [shape: bf16[16,64], index: 11, kind: input, shape index: {}]   ;;  %s5254_s12 = inlined_call_operand.vmem [shape: f32[128,64], index: 12, kind: input, shape index: {}]   ;;  %s5255_s13 = inlined_call_operand.vmem [shape: bf16[64,256], index: 13, kind: input, shape index: {}]   ;;  %s5256_s14 = inlined_call_operand.vmem [shape: f32[128,256], index: 14, kind: input, shape index: {}]   ;;  %s5257_s15 = inlined_call_operand.vmem [shape: bf16[256,1024], index: 15, kind: input, shape index: {}]   ;;  %s5258_s16 = inlined_call_operand.vmem [shape: f32[2,8,1024], index: 16, kind: output, shape index: {}]  }
   0x1   :  { %5261 = sst [smem:[#allocation13_spill]] %s5242_s0 }
   0x2 LB: > { %s3348_s22 = sadd.s32 4294967295, %s3965_s21   ;;  %p3352_p0 = scmp.ge.s32.totalorder %s3965_s21, 1  ;;  %s3965_s21 = sphi %s4053_s21, %s26_s21  }
   0x3   : > { %p482_p1 = scmp.lt.s32.totalorder %s3965_s21, 3 }
   0x5   : > { %p483_p2 = pnand %p3352_p0, %p482_p1 }
   0x7   : > { %486 = sbr.rel (%p483_p2) target bundleno = 1551 (0x60f), region = 84 }
   0xc   : > { %p542_p3 = scmp.lt.s32.totalorder %s3348_s22, 1  ;;  %v3876_v0 = vld [vmem:[%s5245_s3 + $0x4] ss:$20 sps:$4 sm:$0xff]   ;;  %v3879_v1 = vld [vmem:[%s5245_s3 + $0xc] ss:$20 sps:$4 sm:$0xff]   ;;  %v5259_v2 = vmov 0  }
   0xd   : > { %3872 = vset.pattern.permute.xlu0 %v5259_v2  ;;  %3873 = vset.pattern.permute.xlu1 %v5259_v2  ;;  %vm1015_vm0 = vcmask 523264   ;;  %vm1379_vm1 = vcmask 130048   ;;  %vm1735_vm2 = vcmask 392192  }
   0xe   : > { %s5287_s22 = smov (!%p542_p3, %s3348_s22), 1  ;;  %1072 = vmatprep.mubr.bf16.mxu0 %v3876_v0  ;;  %1169 = vmatprep.mubr.bf16.mxu1 %v3879_v1 }
   0xf   : > { %s3862_s27 = smul.u32 576, %s5287_s22  ;;  %s3587_s19 = sshll.u32 %s5287_s22, 5 }
  0x10   : > { %s3861_s18 = smul.u32 48, %s5287_s22  ;;  %s3588_s29 = sshll.u32 %s5287_s22, 6 }
  0x11   : > { %s4075_s30 = scalar_lea.vmem %s5244_s2, %s3862_s27 }
  0x12   : > { %v641_v3 = vld [vmem:[%s4075_s30 + $0xf0] sm:$0xff]  ;;  %v642_v4 = vld [vmem:[%s4075_s30 + $0xf8] sm:$0xff]  ;;  %v639_v14 = vld [vmem:[%s4075_s30 + $0xe0] sm:$0xff]  ;;  %s551_s23 = scalar_lea.vmem %s5243_s1, %s3861_s18  ;;  %s561_s18 = scalar_lea.vmem %s5258_s16, %s3588_s29 }
  0x13   : > { %v625_v5 = vld [vmem:[%s4075_s30 + $0x70] sm:$0xff]  ;;  %v698_v6 = vpack.c.bf16 %v642_v4, %v641_v3  ;;  %v626_v7 = vld [vmem:[%s4075_s30 + $0x78] sm:$0xff]  ;;  %v640_v16 = vld [vmem:[%s4075_s30 + $0xe8] sm:$0xff] }
  0x14   : > { %v673_v8 = vld [vmem:[%s4075_s30 + $0x1f0] sm:$0xff]  ;;  %v674_v9 = vld [vmem:[%s4075_s30 + $0x1f8] sm:$0xff]  ;;  %v690_v10 = vpack.c.bf16 %v626_v7, %v625_v5  ;;  %v623_v17 = vld [vmem:[%s4075_s30 + $0x60] sm:$0xff]  ;;  %v697_v19 = vpack.c.bf16 %v640_v16, %v639_v14 }
  0x15   : > { %v714_v11 = vpack.c.bf16 %v674_v9, %v673_v8  ;;  %v657_v12 = vld [vmem:[%s4075_s30 + $0x170] sm:$0xff]  ;;  %v658_v13 = vld [vmem:[%s4075_s30 + $0x178] sm:$0xff]  ;;  %3589 = vmatprep.subr.bf16.mxu0 %v698_v6  ;;  %v624_v18 = vld [vmem:[%s4075_s30 + $0x68] sm:$0xff] }
  0x16   : > { %v706_v15 = vpack.c.bf16 %v658_v13, %v657_v12  ;;  %3590 = vmatpush3.bf16.msra.mxu0 %v690_v10  ;;  %v689_v20 = vpack.c.bf16 %v624_v18, %v623_v17  ;;  %v671_v21 = vld [vmem:[%s4075_s30 + $0x1e0] sm:$0xff]  ;;  %v672_v22 = vld [vmem:[%s4075_s30 + $0x1e8] sm:$0xff]  ;;  %v637_v26 = vld [vmem:[%s4075_s30 + $0xd0] sm:$0xff] }
  0x17   : > { %3653 = vmatprep.subr.bf16.mxu1 %v714_v11  ;;  %v655_v23 = vld [vmem:[%s4075_s30 + $0x160] sm:$0xff]  ;;  %v713_v24 = vpack.c.bf16 %v672_v22, %v671_v21  ;;  %v656_v25 = vld [vmem:[%s4075_s30 + $0x168] sm:$0xff]  ;;  %v638_v27 = vld [vmem:[%s4075_s30 + $0xd8] sm:$0xff]  ;;  %3591 = vmatprep.subr.bf16.mxu0 %v697_v19 }
  0x18   : > { %3654 = vmatpush3.bf16.msra.mxu1 %v706_v15  ;;  %v705_v28 = vpack.c.bf16 %v656_v25, %v655_v23  ;;  %v696_v29 = vpack.c.bf16 %v638_v27, %v637_v26  ;;  %v621_v30 = vld [vmem:[%s4075_s30 + $0x50] sm:$0xff]  ;;  %v622_v31 = vld [vmem:[%s4075_s30 + $0x58] sm:$0xff]  ;;  %v635_v38 = vld [vmem:[%s4075_s30 + $0xc0] sm:$0xff] }
  0x19   : > { %v669_v32 = vld [vmem:[%s4075_s30 + $0x1d0] sm:$0xff]  ;;  %3655 = vmatprep.subr.bf16.mxu1 %v713_v24  ;;  %v670_v33 = vld [vmem:[%s4075_s30 + $0x1d8] sm:$0xff]  ;;  %v688_v36 = vpack.c.bf16 %v622_v31, %v621_v30  ;;  %v636_v39 = vld [vmem:[%s4075_s30 + $0xc8] sm:$0xff] }
  0x1a   : > { %v653_v34 = vld [vmem:[%s4075_s30 + $0x150] sm:$0xff]  ;;  %v654_v35 = vld [vmem:[%s4075_s30 + $0x158] sm:$0xff]  ;;  %3592 = vmatpush3.bf16.msra.mxu0 %v689_v20  ;;  %v712_v37 = vpack.c.bf16 %v670_v33, %v669_v32  ;;  %v619_v40 = vld [vmem:[%s4075_s30 + $0x40] sm:$0xff]  ;;  %v695_v42 = vpack.c.bf16 %v636_v39, %v635_v38 }
  0x1b   : > { %3593 = vmatprep.subr.bf16.mxu0 %v696_v29  ;;  %v704_v41 = vpack.c.bf16 %v654_v35, %v653_v34  ;;  %v620_v43 = vld [vmem:[%s4075_s30 + $0x48] sm:$0xff]  ;;  %v667_v44 = vld [vmem:[%s4075_s30 + $0x1c0] sm:$0xff]  ;;  %v633_v49 = vld [vmem:[%s4075_s30 + $0xb0] sm:$0xff] }
  0x1c   : > { %3656 = vmatpush3.bf16.msra.mxu1 %v705_v28  ;;  %v668_v45 = vld [vmem:[%s4075_s30 + $0x1c8] sm:$0xff]  ;;  %v651_v47 = vld [vmem:[%s4075_s30 + $0x140] sm:$0xff]  ;;  %v634_v50 = vld [vmem:[%s4075_s30 + $0xb8] sm:$0xff]  ;;  %v687_v51 = vpack.c.bf16 %v620_v43, %v619_v40 }
  0x1d   : > { %3657 = vmatprep.subr.bf16.mxu1 %v712_v37  ;;  %v711_v46 = vpack.c.bf16 %v668_v45, %v667_v44  ;;  %v652_v48 = vld [vmem:[%s4075_s30 + $0x148] sm:$0xff]  ;;  %v665_v52 = vld [vmem:[%s4075_s30 + $0x1b0] sm:$0xff]  ;;  %v666_v53 = vld [vmem:[%s4075_s30 + $0x1b8] sm:$0xff]  ;;  %v694_v55 = vpack.c.bf16 %v634_v50, %v633_v49 }
  0x1e   : > { %3594 = vmatpush3.bf16.msra.mxu0 %v688_v36  ;;  %v703_v54 = vpack.c.bf16 %v652_v48, %v651_v47  ;;  %v617_v56 = vld [vmem:[%s4075_s30 + $0x30] sm:$0xff]  ;;  %v618_v57 = vld [vmem:[%s4075_s30 + $0x38] sm:$0xff]  ;;  %v710_v59 = vpack.c.bf16 %v666_v53, %v665_v52  ;;  %v631_v61 = vld [vmem:[%s4075_s30 + $0xa0] sm:$0xff] }
  0x1f   : > { %3595 = vmatprep.subr.bf16.mxu0 %v695_v42  ;;  %v649_v58 = vld [vmem:[%s4075_s30 + $0x130] sm:$0xff]  ;;  %v650_v60 = vld [vmem:[%s4075_s30 + $0x138] sm:$0xff]  ;;  %v632_v62 = vld [vmem:[%s4075_s30 + $0xa8] sm:$0xff]  ;;  %v686_v1 = vpack.c.bf16 %v618_v57, %v617_v56 }
  0x20   : > { %3658 = vmatpush3.bf16.msra.mxu1 %v704_v41  ;;  %v663_v63 = vld [vmem:[%s4075_s30 + $0x1a0] sm:$0xff]  ;;  %v664_v0 = vld [vmem:[%s4075_s30 + $0x1a8] sm:$0xff]  ;;  %v702_v3 = vpack.c.bf16 %v650_v60, %v649_v58  ;;  %v693_v4 = vpack.c.bf16 %v632_v62, %v631_v61  ;;  %v629_v10 = vld [vmem:[%s4075_s30 + $0x90] sm:$0xff] }
  0x21   : > { %3659 = vmatprep.subr.bf16.mxu1 %v711_v46  ;;  %v615_v5 = vld [vmem:[%s4075_s30 + $0x20] sm:$0xff]  ;;  %v616_v6 = vld [vmem:[%s4075_s30 + $0x28] sm:$0xff]  ;;  %v709_v8 = vpack.c.bf16 %v664_v0, %v663_v63  ;;  %v630_v11 = vld [vmem:[%s4075_s30 + $0x98] sm:$0xff] }
  0x22   : > { %3596 = vmatpush3.bf16.msra.mxu0 %v687_v51  ;;  %v647_v7 = vld [vmem:[%s4075_s30 + $0x120] sm:$0xff]  ;;  %v648_v9 = vld [vmem:[%s4075_s30 + $0x128] sm:$0xff]  ;;  %v661_v12 = vld [vmem:[%s4075_s30 + $0x190] sm:$0xff]  ;;  %v685_v14 = vpack.c.bf16 %v616_v6, %v615_v5  ;;  %v692_v17 = vpack.c.bf16 %v630_v11, %v629_v10 }
  0x23   : > { %3597 = vmatprep.subr.bf16.mxu0 %v694_v55  ;;  %v662_v13 = vld [vmem:[%s4075_s30 + $0x198] sm:$0xff]  ;;  %v613_v15 = vld [vmem:[%s4075_s30 + $0x10] sm:$0xff]  ;;  %v701_v16 = vpack.c.bf16 %v648_v9, %v647_v7  ;;  %v627_v22 = vld [vmem:[%s4075_s30 + $0x80] sm:$0xff] }
  0x24   : > { %3660 = vmatpush3.bf16.msra.mxu1 %v703_v54  ;;  %v614_v18 = vld [vmem:[%s4075_s30 + $0x18] sm:$0xff]  ;;  %v645_v19 = vld [vmem:[%s4075_s30 + $0x110] sm:$0xff]  ;;  %v708_v21 = vpack.c.bf16 %v662_v13, %v661_v12  ;;  %v628_v23 = vld [vmem:[%s4075_s30 + $0x88] sm:$0xff] }
  0x25   : > { %3661 = vmatprep.subr.bf16.mxu1 %v710_v59  ;;  %v646_v20 = vld [vmem:[%s4075_s30 + $0x118] sm:$0xff]  ;;  %v611_v24 = vld [vmem:[%s4075_s30] sm:$0xff]  ;;  %v612_v25 = vld [vmem:[%s4075_s30 + $0x8] sm:$0xff]  ;;  %v684_v28 = vpack.c.bf16 %v614_v18, %v613_v15  ;;  %v691_v32 = vpack.c.bf16 %v628_v23, %v627_v22 }
  0x26   : > { %3598 = vmatpush3.bf16.msra.mxu0 %v686_v1  ;;  %v659_v26 = vld [vmem:[%s4075_s30 + $0x180] sm:$0xff]  ;;  %v660_v27 = vld [vmem:[%s4075_s30 + $0x188] sm:$0xff]  ;;  %v700_v31 = vpack.c.bf16 %v646_v20, %v645_v19  ;;  %v681_v33 = vld [vmem:[%s4075_s30 + $0x230] sm:$0xff]  ;;  %v683_v36 = vpack.c.bf16 %v612_v25, %v611_v24 }
  0x27   : > { %3599 = vmatprep.subr.bf16.mxu0 %v693_v4  ;;  %v643_v29 = vld [vmem:[%s4075_s30 + $0x100] sm:$0xff]  ;;  %v644_v30 = vld [vmem:[%s4075_s30 + $0x108] sm:$0xff]  ;;  %v707_v34 = vpack.c.bf16 %v660_v27, %v659_v26  ;;  %v682_v35 = vld [vmem:[%s4075_s30 + $0x238] sm:$0xff] }
  0x28   : > { %3662 = vmatpush3.bf16.msra.mxu1 %v702_v3  ;;  %v699_v37 = vpack.c.bf16 %v644_v30, %v643_v29  ;;  %v718_v38 = vpack.c.bf16 %v682_v35, %v681_v33  ;;  %v3874_v39 = vld [vmem:[%s5245_s3] ss:$20 sps:$4 sm:$0xff]   ;;  %v680_v41 = vld [vmem:[%s4075_s30 + $0x228] sm:$0xff]  ;;  %v678_v47 = vld [vmem:[%s4075_s30 + $0x218] sm:$0xff] }
  0x29   : > { %3663 = vmatprep.subr.bf16.mxu1 %v709_v8  ;;  %v679_v40 = vld [vmem:[%s4075_s30 + $0x220] sm:$0xff]  ;;  %v3877_v42 = vld [vmem:[%s5245_s3 + $0x8] ss:$20 sps:$4 sm:$0xff]   ;;  %v677_v45 = vld [vmem:[%s4075_s30 + $0x210] sm:$0xff] }
  0x2a   : > { %3600 = vmatpush3.bf16.msra.mxu0 %v685_v14  ;;  %v3880_v43 = vld [vmem:[%s5245_s3 + $0x2c] ss:$20 sps:$4 sm:$0xff]   ;;  %v3883_v44 = vld [vmem:[%s5245_s3 + $0x34] ss:$20 sps:$4 sm:$0xff]   ;;  %v717_v46 = vpack.c.bf16 %v680_v41, %v679_v40  ;;  %v716_v49 = vpack.c.bf16 %v678_v47, %v677_v45  ;;  %v3885_v52 = vld [vmem:[%s5245_s3 + $0x30] ss:$20 sps:$4 sm:$0xff]  }
  0x2b   : > { %3601 = vmatprep.subr.bf16.mxu0 %v692_v17  ;;  %v3882_v48 = vld [vmem:[%s5245_s3 + $0x28] ss:$20 sps:$4 sm:$0xff]   ;;  %v675_v50 = vld [vmem:[%s4075_s30 + $0x200] sm:$0xff]  ;;  %v721_v57 = vld [vmem:[%s5246_s4 + $0x10] sm:$0xff] }
  0x2c   : > { %3664 = vmatpush3.bf16.msra.mxu1 %v701_v16  ;;  %v676_v51 = vld [vmem:[%s4075_s30 + $0x208] sm:$0xff]  ;;  %v719_v54 = vld [vmem:[%s5246_s4] sm:$0xff]  ;;  %v3889_v55 = vld [vmem:[%s5245_s3 + $0x5c] ss:$20 sps:$4 sm:$0xff]   ;;  %747 = vperm.xlu1 %3873, %v721_v57   ;;  %s5285_s30 = sld [smem:[#allocation13_spill]] }
  0x2d   : > { %3665 = vmatprep.subr.bf16.mxu1 %v708_v21  ;;  %v3886_v53 = vld [vmem:[%s5245_s3 + $0x54] ss:$20 sps:$4 sm:$0xff]   ;;  %737 = vperm.xlu0 %3872, %v719_v54   ;;  %v715_v56 = vpack.c.bf16 %v676_v51, %v675_v50  ;;  %v722_v59 = vld [vmem:[%s5246_s4 + $0x18] sm:$0xff]  ;;  %v3888_v60 = vld [vmem:[%s5245_s3 + $0x50] ss:$20 sps:$4 sm:$0xff]  }
  0x2e   : > { %3602 = vmatpush3.bf16.msra.mxu0 %v684_v28  ;;  %v720_v58 = vld [vmem:[%s5246_s4 + $0x8] sm:$0xff]  ;;  %v723_v62 = vld [vmem:[%s5246_s4 + $0x20] sm:$0xff]  ;;  %v3892_v63 = vld [vmem:[%s5245_s3 + $0x7c] ss:$20 sps:$4 sm:$0xff]  }
  0x2f   : > { %3603 = vmatprep.subr.bf16.mxu0 %v691_v32  ;;  %v3891_v61 = vld [vmem:[%s5245_s3 + $0x58] ss:$20 sps:$4 sm:$0xff]   ;;  %v725_v3 = vld [vmem:[%s5246_s4 + $0x30] sm:$0xff]  ;;  %v727_v7 = vld [vmem:[%s5246_s4 + $0x40] sm:$0xff] }
  0x30   : > { %3666 = vmatpush3.bf16.msra.mxu1 %v700_v31  ;;  %752 = vperm.xlu1 %3873, %v722_v59   ;;  %v724_v0 = vld [vmem:[%s5246_s4 + $0x28] sm:$0xff]  ;;  %v3895_v1 = vld [vmem:[%s5245_s3 + $0x84] ss:$20 sps:$4 sm:$0xff]   ;;  %v3897_v6 = vld [vmem:[%s5245_s3 + $0x80] ss:$20 sps:$4 sm:$0xff]  }
  0x31   : > { %3667 = vmatprep.subr.bf16.mxu1 %v707_v34  ;;  %742 = vperm.xlu0 %3872, %v720_v58   ;;  %v726_v4 = vld [vmem:[%s5246_s4 + $0x38] sm:$0xff]  ;;  %v3901_v9 = vld [vmem:[%s5245_s3 + $0xac] ss:$20 sps:$4 sm:$0xff]   ;;  %v729_v11 = vld [vmem:[%s5246_s4 + $0x50] sm:$0xff] }
  0x32   : > { %3604 = vmatpush3.bf16.msra.mxu0 %v683_v36  ;;  %v3894_v5 = vld [vmem:[%s5245_s3 + $0x78] ss:$20 sps:$4 sm:$0xff]   ;;  %v3900_v13 = vld [vmem:[%s5245_s3 + $0xa0] ss:$20 sps:$4 sm:$0xff]   ;;  %v3903_v15 = vld [vmem:[%s5245_s3 + $0xa8] ss:$20 sps:$4 sm:$0xff]   ;;  %s546_s24 = scalar_lea.vmem %s5285_s30, %s3587_s19 }
  0x33   : > { %3765 = vmatprep.subr.bf16.mxu0 %v718_v38  ;;  %v3898_v8 = vld [vmem:[%s5245_s3 + $0xa4] ss:$20 sps:$4 sm:$0xff]   ;;  %v728_v10 = vld [vmem:[%s5246_s4 + $0x48] sm:$0xff]  ;;  %v733_v19 = vld [vmem:[%s5246_s4 + $0x70] sm:$0xff] }
  0x34   : > { %3668 = vmatpush3.bf16.msra.mxu1 %v699_v37  ;;  %762 = vperm.xlu1 %3873, %v724_v0   ;;  %v730_v12 = vld [vmem:[%s5246_s4 + $0x58] sm:$0xff]  ;;  %v731_v14 = vld [vmem:[%s5246_s4 + $0x60] sm:$0xff]  ;;  %v732_v17 = vld [vmem:[%s5246_s4 + $0x68] sm:$0xff] }
  0x35   : > { %1073 = vmatmul.mubr.bf16.vlgmr.msra.gmra.mxu0 %v3874_v39  ;;  %757 = vperm.xlu0 %3872, %v723_v62   ;;  %v3904_v16 = vld [vmem:[%s5245_s3 + $0xcc] ss:$20 sps:$4 sm:$0xff]   ;;  %v3907_v18 = vld [vmem:[%s5245_s3 + $0xd4] ss:$20 sps:$4 sm:$0xff]   ;;  %v734_v20 = vld [vmem:[%s5246_s4 + $0x78] sm:$0xff] }
  0x36   : > { %3766 = vmatpush3.bf16.msra.mxu0 %v718_v38  ;;  %1080 = vmatprep.mubr.bf16.mxu0 %v3880_v43  ;;  %v3906_v21 = vld [vmem:[%s5245_s3 + $0xc8] ss:$20 sps:$4 sm:$0xff]   ;;  %v1857_v22 = vld [vmem:[%s5249_s7] sm:$0xff]  ;;  %v1859_v27 = vld [vmem:[%s5249_s7 + $0x10] sm:$0xff] }
  0x37   : > { %1170 = vmatmul.mubr.bf16.vlgmr.msra.gmra.mxu1 %v3877_v42  ;;  %3767 = vmatprep.subr.bf16.mxu0 %v717_v46  ;;  %v3909_v23 = vld [vmem:[%s5245_s3 + $0xd0] ss:$20 sps:$4 sm:$0xff]   ;;  %v3910_v24 = vld [vmem:[%s5245_s3 + $0xf4] ss:$20 sps:$4 sm:$0xff]   ;;  %v1860_v28 = vld [vmem:[%s5249_s7 + $0x18] sm:$0xff] }
  0x38   : > { %1177 = vmatprep.mubr.bf16.mxu1 %v3883_v44  ;;  %772 = vperm.xlu1 %3873, %v726_v4   ;;  %v1858_v25 = vld [vmem:[%s5249_s7 + $0x8] sm:$0xff]  ;;  %v3913_v26 = vld [vmem:[%s5245_s3 + $0xfc] ss:$20 sps:$4 sm:$0xff]   ;;  %v1861_v30 = vld [vmem:[%s5249_s7 + $0x20] sm:$0xff] }
  0x39   : > { %767 = vperm.xlu0 %3872, %v725_v3   ;;  %v3912_v29 = vld [vmem:[%s5245_s3 + $0xf0] ss:$20 sps:$4 sm:$0xff]   ;;  %v3915_v31 = vld [vmem:[%s5245_s3 + $0xf8] ss:$20 sps:$4 sm:$0xff]   ;;  %v3921_v39 = vld [vmem:[%s5245_s3 + $0x120] ss:$20 sps:$4 sm:$0xff]  }
  0x3a   : > { %3768 = vmatpush3.bf16.msra.mxu0 %v717_v46  ;;  %v3916_v32 = vld [vmem:[%s5245_s3 + $0x11c] ss:$20 sps:$4 sm:$0xff]   ;;  %v1862_v33 = vld [vmem:[%s5249_s7 + $0x28] sm:$0xff]  ;;  %v3919_v34 = vld [vmem:[%s5245_s3 + $0x124] ss:$20 sps:$4 sm:$0xff]  }
  0x3b   : > { %3769 = vmatprep.subr.bf16.mxu0 %v716_v49  ;;  %v1863_v35 = vld [vmem:[%s5249_s7 + $0x30] sm:$0xff]  ;;  %v1864_v36 = vld [vmem:[%s5249_s7 + $0x38] sm:$0xff]  ;;  %v1865_v38 = vld [vmem:[%s5249_s7 + $0x40] sm:$0xff] }
  0x3c   : > { %782 = vperm.xlu1 %3873, %v728_v10   ;;  %v3918_v37 = vld [vmem:[%s5245_s3 + $0x118] ss:$20 sps:$4 sm:$0xff]   ;;  %v3922_v40 = vld [vmem:[%s5245_s3 + $0x10] ss:$20 sps:$4 sm:$0xff]   ;;  %v3924_v46 = vld [vmem:[%s5245_s3 + $0x60] ss:$20 sps:$4 sm:$0xff]  }
  0x3d   : > { %1081 = vmatmul.mubr.bf16.gmra.mxu0 %v3882_v48  ;;  %777 = vperm.xlu0 %3872, %v727_v7   ;;  %v1866_v41 = vld [vmem:[%s5249_s7 + $0x48] sm:$0xff]  ;;  %v1867_v42 = vld [vmem:[%s5249_s7 + $0x50] sm:$0xff]  ;;  %v1868_v43 = vld [vmem:[%s5249_s7 + $0x58] sm:$0xff] }
  0x3e   : > { %1088 = vmatprep.mubr.bf16.mxu0 %v3886_v53  ;;  %3770 = vmatpush3.bf16.msra.mxu0 %v716_v49  ;;  %v3923_v44 = vld [vmem:[%s5245_s3 + $0x38] ss:$20 sps:$4 sm:$0xff]   ;;  %v1869_v45 = vld [vmem:[%s5249_s7 + $0x60] sm:$0xff]  ;;  %v1871_v48 = vld [vmem:[%s5249_s7 + $0x70] sm:$0xff] }
  0x3f   : > { %1178 = vmatmul.mubr.bf16.gmra.mxu1 %v3885_v52  ;;  %3771 = vmatprep.subr.bf16.mxu0 %v715_v56  ;;  %v1870_v47 = vld [vmem:[%s5249_s7 + $0x68] sm:$0xff]  ;;  %v1872_v49 = vld [vmem:[%s5249_s7 + $0x78] sm:$0xff]  ;;  %v2319_v51 = vld [vmem:[%s5252_s10] sm:$0xff] }
  0x40   : > { %1185 = vmatprep.mubr.bf16.mxu1 %v3889_v55  ;;  %792 = vperm.xlu1 %3873, %v730_v12   ;;  %v3925_v50 = vld [vmem:[%s5245_s3 + $0x88] ss:$20 sps:$4 sm:$0xff]   ;;  %v3926_v52 = vld [vmem:[%s5245_s3 + $0xb0] ss:$20 sps:$4 sm:$0xff]   ;;  %v3927_v53 = vld [vmem:[%s5245_s3 + $0xd8] ss:$20 sps:$4 sm:$0xff]  }
  0x41   : > { %787 = vperm.xlu0 %3872, %v729_v11   ;;  %v3928_v54 = vld [vmem:[%s5245_s3 + $0x100] ss:$20 sps:$4 sm:$0xff]  }
  0x42   : > { %3772 = vmatpush3.bf16.msra.mxu0 %v715_v56  ;;  %v3930_v55 = vld [vmem:[%s5253_s11] sm:$0xff]   ;;  %v3929_v56 = vld [vmem:[%s5245_s3 + $0x128] ss:$20 sps:$4 sm:$0xff]  }
  0x43   : > { %3789 = vmatprep.subr.bf16.mxu1 %v3930_v55 }
  0x44   : > { %802 = vperm.xlu1 %3873, %v732_v17   ;;  %3790 = vmatpush3.bf16.msra.mxu1 %v3930_v55 }
  0x45   : > { %1089 = vmatmul.mubr.bf16.gmra.mxu0 %v3888_v60  ;;  %797 = vperm.xlu0 %3872, %v731_v14  }
  0x46   : > { %1096 = vmatprep.mubr.bf16.mxu0 %v3892_v63 }
  0x47   : > { %1186 = vmatmul.mubr.bf16.gmra.mxu1 %v3891_v61 }
  0x48   : > { %1193 = vmatprep.mubr.bf16.mxu1 %v3895_v1  ;;  %812 = vperm.xlu1 %3873, %v734_v20  }
  0x49   : > { %807 = vperm.xlu0 %3872, %v733_v19  }
  0x4c   : > { %1880 = vperm.xlu1 %3873, %v1858_v25  }
  0x4d   : > { %1097 = vmatmul.mubr.bf16.gmra.mxu0 %v3894_v5  ;;  %1875 = vperm.xlu0 %3872, %v1857_v22  }
  0x4e   : > { %1104 = vmatprep.mubr.bf16.mxu0 %v3898_v8 }
  0x4f   : > { %1194 = vmatmul.mubr.bf16.gmra.mxu1 %v3897_v6 }
  0x50   : > { %1201 = vmatprep.mubr.bf16.mxu1 %v3901_v9  ;;  %1890 = vperm.xlu1 %3873, %v1860_v28  }
  0x51   : > { %1885 = vperm.xlu0 %3872, %v1859_v27  }
  0x54   : > { %1900 = vperm.xlu1 %3873, %v1862_v33  }
  0x55   : > { %1105 = vmatmul.mubr.bf16.gmra.mxu0 %v3900_v13  ;;  %1895 = vperm.xlu0 %3872, %v1861_v30  }
  0x56   : > { %1112 = vmatprep.mubr.bf16.mxu0 %v3904_v16 }
  0x57   : > { %1202 = vmatmul.mubr.bf16.gmra.mxu1 %v3903_v15 }
  0x58   : > { %1209 = vmatprep.mubr.bf16.mxu1 %v3907_v18  ;;  %1910 = vperm.xlu1 %3873, %v1864_v36  }
  0x59   : > { %1905 = vperm.xlu0 %3872, %v1863_v35  }
  0x5c   : > { %1920 = vperm.xlu1 %3873, %v1866_v41  }
  0x5d   : > { %1113 = vmatmul.mubr.bf16.gmra.mxu0 %v3906_v21  ;;  %1915 = vperm.xlu0 %3872, %v1865_v38  }
  0x5e   : > { %1120 = vmatprep.mubr.bf16.mxu0 %v3910_v24 }
  0x5f   : > { %1210 = vmatmul.mubr.bf16.gmra.mxu1 %v3909_v23 }
  0x60   : > { %1217 = vmatprep.mubr.bf16.mxu1 %v3913_v26  ;;  %1930 = vperm.xlu1 %3873, %v1868_v43  }
  0x61   : > { %1925 = vperm.xlu0 %3872, %v1867_v42  }
  0x64   : > { %1940 = vperm.xlu1 %3873, %v1870_v47  }
  0x65   : > { %1121 = vmatmul.mubr.bf16.gmra.mxu0 %v3912_v29  ;;  %1935 = vperm.xlu0 %3872, %v1869_v45  }
  0x66   : > { %1128 = vmatprep.mubr.bf16.mxu0 %v3916_v32 }
  0x67   : > { %1218 = vmatmul.mubr.bf16.gmra.mxu1 %v3915_v31 }
  0x68   : > { %1225 = vmatprep.mubr.bf16.mxu1 %v3919_v34  ;;  %1950 = vperm.xlu1 %3873, %v1872_v49  }
  0x69   : > { %1945 = vperm.xlu0 %3872, %v1871_v48  }
  0x6d   : > { %1129 = vmatmul.mubr.bf16.gmra.mxu0 %v3918_v37  ;;  %2322 = vperm.xlu0 %3872, %v2319_v51  }
  0x6e   : > { %3773 = vmatprep.mubr.msk.bf16.mxu0 %vm1015_vm0, %v3922_v40 }
  0x6f   : > { %1226 = vmatmul.mubr.bf16.gmra.mxu1 %v3921_v39 }
  0x75   : > { %3774 = vmatmul.mubr.msk.bf16.vlgmr.msra.gmra.mxu0 %vm1015_vm0, %v3923_v44 }
  0x76   : > { %3777 = vmatprep.mubr.msk.bf16.mxu0 %vm1015_vm0, %v3924_v46 }
  0x7d   : > { %3778 = vmatmul.mubr.msk.bf16.gmra.mxu0 %vm1015_vm0, %v3925_v50 }
  0x7e   : > { %3781 = vmatprep.mubr.msk.bf16.mxu0 %vm1015_vm0, %v3926_v52 }
  0x85   : > { %3782 = vmatmul.mubr.msk.bf16.gmra.mxu0 %vm1015_vm0, %v3927_v53 }
  0x86   : > { %3785 = vmatprep.mubr.msk.bf16.mxu0 %vm1015_vm0, %v3928_v54 }
  0x8d   : > { %3786 = vmatmul.mubr.msk.bf16.gmra.mxu0 %vm1015_vm0, %v3929_v56 }
  0xa7   : > { %v748_v37 = vpop.permute.xlu1 %747 }
  0xa8   : > { %v738_v40 = vpop.permute.xlu0 %737 }
  0xab   : > { %v753_v44 = vpop.permute.xlu1 %752 }
  0xac   : > { %v743_v46 = vpop.permute.xlu0 %742 }
  0xaf   : > { %v763_v50 = vpop.permute.xlu1 %762 }
  0xb0   : > { %v758_v53 = vpop.permute.xlu0 %757 }
  0xf5   : > { %v3605_v57 = vpop.f32.mrf.mxu0 }
  0xf7   : > { %v4373_v58 = vpop.f32.mrf.mxu1  ;;  %v3606_v59 = vpop.f32.mrf.mxu0 }
  0xf8   : > { %v3607_v55 = vadd.f32 %v3606_v59, %v3605_v57 }
  0xf9   : > { %v4375_v60 = vpop.f32.mrf.mxu1  ;;  %v3608_v61 = vpop.f32.mrf.mxu0 }
  0xfb   : > { %v4377_v62 = vpop.f32.mrf.mxu1  ;;  %v3609_v63 = vpop.f32.mrf.mxu0 }
  0xfd   : > { %v4379_v0 = vpop.f32.mrf.mxu1  ;;  %v3611_v1 = vpop.f32.mrf.mxu0 }
  0xff   : > { %v4381_v3 = vpop.f32.mrf.mxu1  ;;  %v3612_v4 = vpop.f32.mrf.mxu0 }
 0x100   : > { %v3613_v2 = vadd.f32 %v3612_v4, %v3611_v1 }
 0x101   : > { %v4383_v5 = vpop.f32.mrf.mxu1  ;;  %v3614_v6 = vpop.f32.mrf.mxu0 }
 0x102   : > { %v3677_v57 = vadd.f32 %v4383_v5, %v4381_v3 }
 0x103   : > { %v3678_v7 = vpop.f32.mrf.mxu1  ;;  %v3615_v8 = vpop.f32.mrf.mxu0 }
 0x104   : > { %v3616_v56 = vadd.f32 %v3615_v8, %v3614_v6 }
 0x105   : > { %v3679_v9 = vpop.f32.mrf.mxu1  ;;  %v4385_v10 = vpop.f32.mrf.mxu0 }
 0x107   : > { %v4387_v11 = vpop.f32.mrf.mxu1  ;;  %v4389_v12 = vpop.f32.mrf.mxu0 }
 0x108   : > { %v3619_v6 = vadd.f32 %v4389_v12, %v4385_v10 }
 0x109   : > { %v4391_v13 = vpop.f32.mrf.mxu1  ;;  %v4393_v14 = vpop.f32.mrf.mxu0 }
 0x10a   : > { %v3683_v10 = vadd.f32 %v4391_v13, %v4387_v11 }
 0x10b   : > { %v4395_v15 = vpop.f32.mrf.mxu1  ;;  %v4397_v16 = vpop.f32.mrf.mxu0 }
 0x10d   : > { %v4399_v17 = vpop.f32.mrf.mxu1  ;;  %v3623_v18 = vpop.f32.mrf.mxu0 }
 0x10e   : > { %v3686_v11 = vadd.f32 %v4399_v17, %v4395_v15 }
 0x10f   : > { %v4401_v19 = vpop.f32.mrf.mxu1  ;;  %v3624_v20 = vpop.f32.mrf.mxu0 }
 0x111   : > { %v4403_v21 = vpop.f32.mrf.mxu1  ;;  %v3626_v22 = vpop.f32.mrf.mxu0 }
 0x113   : > { %v4405_v23 = vpop.f32.mrf.mxu1  ;;  %v3627_v24 = vpop.f32.mrf.mxu0 }
 0x115   : > { %v4407_v25 = vpop.f32.mrf.mxu1  ;;  %v4409_v26 = vpop.f32.mrf.mxu0 }
 0x117   : > { %v4411_v27 = vpop.f32.mrf.mxu1  ;;  %v4413_v28 = vpop.f32.mrf.mxu0 }
 0x119   : > { %v4415_v29 = vpop.f32.mrf.mxu1  ;;  %v4417_v30 = vpop.f32.mrf.mxu0 }
 0x11b   : > { %v4419_v31 = vpop.f32.mrf.mxu1  ;;  %v4421_v32 = vpop.f32.mrf.mxu0 }
 0x11c   : > { %5262 = vst [vmem:[#allocation2_spill] sm:$0xff] %v4419_v31  ;;  %v773_v31 = vpop.permute.xlu1 %772 }
 0x11d   : > { %v4423_v33 = vpop.f32.mrf.mxu1  ;;  %v4425_v34 = vpop.f32.mrf.mxu0 }
 0x11e   : > { %5263 = vst [vmem:[#allocation3_spill] sm:$0xff] %v4423_v33  ;;  %v3610_v33 = vadd.f32 %v3609_v63, %v3608_v61  ;;  %v3674_v61 = vadd.f32 %v4379_v0, %v4377_v62 }
 0x11f   : > { %v4427_v35 = vpop.f32.mrf.mxu1  ;;  %v4429_v36 = vpop.f32.mrf.mxu0 }
 0x120   : > { %5264 = vst [vmem:[#allocation4_spill] sm:$0xff] %v4427_v35  ;;  %v3680_v35 = vadd.f32 %v3679_v9, %v3678_v7  ;;  %v1078_v4 = vadd.f32 %v3610_v33, %v743_v46  ;;  %v4471_v8 = vpop.permute.xlu1 %782  ;;  %v3622_v33 = vadd.f32 %v4397_v16, %v4393_v14  ;;  %v3689_v46 = vadd.f32 %v4403_v21, %v4401_v19 }
 0x121   : > { %v4431_v38 = vpop.f32.mrf.mxu0  ;;  %v4433_v39 = vpop.f32.mrf.mxu1 }
 0x122   : > { %5265 = vst [vmem:[#allocation5_spill] sm:$0xff] %v4433_v39  ;;  %v768_v39 = vpop.permute.xlu0 %767  ;;  %v1175_v0 = vadd.f32 %v3674_v61, %v1078_v4 }
 0x123   : > { %v4435_v41 = vpop.f32.mrf.mxu0  ;;  %v4437_v42 = vpop.f32.mrf.mxu1 }
 0x124   : > { %v3640_v19 = vadd.f32 %v4435_v41, %v4431_v38  ;;  %v3695_v38 = vadd.f32 %v4415_v29, %v4411_v27  ;;  %v5276_v29 = vld [vmem:[#allocation2_spill] sm:$0xff] }
 0x125   : > { %v4439_v43 = vpop.f32.mrf.mxu0  ;;  %v4443_v47 = vpop.f32.mrf.mxu1 }
 0x126   : > { %5266 = vst [vmem:[#allocation6_spill] sm:$0xff] %v4439_v43  ;;  %5268 = vst [vmem:[#allocation8_spill] sm:$0xff] %v4443_v47  ;;  %v1083_v47 = vadd.f32 %v3613_v2, %v748_v37  ;;  %v3625_v2 = vadd.f32 %v3624_v20, %v3623_v18  ;;  %v778_v37 = vpop.permute.xlu0 %777  ;;  %v3692_v18 = vadd.f32 %v4407_v25, %v4405_v23 }
 0x127   : > { %v4441_v45 = vpop.f32.mrf.mxu0  ;;  %v4449_v51 = vpop.f32.mrf.mxu1 }
 0x128   : > { %5267 = vst [vmem:[#allocation7_spill] sm:$0xff] %v4441_v45  ;;  %5271 = vst [vmem:[#allocation11_spill] sm:$0xff] %v4449_v51  ;;  %v3671_v51 = vadd.f32 %v4375_v60, %v4373_v58  ;;  %v3628_v58 = vadd.f32 %v3627_v24, %v3626_v22  ;;  %v1180_v3 = vadd.f32 %v3677_v57, %v1083_v47 }
 0x129   : > { %v4445_v48 = vpop.f32.mrf.mxu0  ;;  %v4455_v43 = vpop.f32.mrf.mxu1  ;;  %v1091_v22 = vadd.f32 %v3619_v6, %v758_v53 }
 0x12a   : > { %5269 = vst [vmem:[#allocation9_spill] sm:$0xff] %v4445_v48  ;;  %v1102_v24 = vadd.f32 %v3628_v58, %v773_v31  ;;  %v3631_v31 = vadd.f32 %v4413_v28, %v4409_v26  ;;  %v3634_v26 = vadd.f32 %v4421_v32, %v4417_v30  ;;  %v5274_v32 = vld [vmem:[#allocation4_spill] sm:$0xff] }
 0x12b   : > { %v4447_v49 = vpop.f32.mrf.mxu0  ;;  %v4465_v59 = vpop.f32.mrf.mxu1  ;;  %v1188_v53 = vadd.f32 %v3683_v10, %v1091_v22 }
 0x12c   : > { %5270 = vst [vmem:[#allocation10_spill] sm:$0xff] %v4447_v49  ;;  %v1075_v49 = vadd.f32 %v3607_v55, %v738_v40  ;;  %v1199_v55 = vadd.f32 %v3692_v18, %v1102_v24  ;;  %v1107_v61 = vadd.f32 %v3631_v31, %v778_v37  ;;  %v1110_v27 = vadd.f32 %v3634_v26, %v4471_v8 }
 0x12d   : > { %v4451_v52 = vpop.f32.mrf.mxu0  ;;  %v4473_v9 = vpop.f32.mrf.mxu1  ;;  %v5273_v6 = vld [vmem:[#allocation8_spill] sm:$0xff] }
 0x12e   : > { %5272 = vst [vmem:[#allocation12_spill] sm:$0xff] %v4451_v52  ;;  %v1086_v52 = vadd.f32 %v3616_v56, %v753_v44  ;;  %v1172_v60 = vadd.f32 %v3671_v51, %v1075_v49  ;;  %v1094_v49 = vadd.f32 %v3622_v33, %v763_v50  ;;  %v793_v51 = vpop.permute.xlu1 %792  ;;  %v3637_v50 = vadd.f32 %v4429_v36, %v4425_v34 }
 0x12f   : > { %v4453_v54 = vpop.f32.mrf.mxu0  ;;  %v4483_v47 = vpop.f32.mrf.mxu1  ;;  %v1118_v36 = vadd.f32 %v3640_v19, %v793_v51  ;;  %v3704_v58 = vadd.f32 %v5273_v6, %v4437_v42  ;;  %v5278_v42 = vld [vmem:[#allocation6_spill] sm:$0xff]  ;;  %v5279_v24 = vld [vmem:[#allocation7_spill] sm:$0xff] }
 0x130   : > { %v1183_v7 = vadd.f32 %v3680_v35, %v1086_v52  ;;  %v1099_v35 = vadd.f32 %v3625_v2, %v768_v39  ;;  %v788_v39 = vpop.permute.xlu0 %787  ;;  %v1191_v4 = vadd.f32 %v3686_v11, %v1094_v49  ;;  %v3643_v18 = vadd.f32 %v5279_v24, %v5278_v42  ;;  %v3931_v24 = vld [vmem:[%s5247_s5] sm:$0xff]  }
 0x131   : > { %v4457_v45 = vpop.f32.mrf.mxu0  ;;  %v3712_v56 = vpop.f32.mrf.mxu1  ;;  %v1115_v30 = vadd.f32 %v3637_v50, %v788_v39 }
 0x132   : > { %v1196_v17 = vadd.f32 %v3689_v46, %v1099_v35  ;;  %v803_v34 = vpop.permute.xlu1 %802  ;;  %v1215_v46 = vadd.f32 %v3704_v58, %v1118_v36  ;;  %v3713_v26 = vadd.f32 %v3712_v56, %v4483_v47 }
 0x133   : > { %v4459_v48 = vpop.f32.mrf.mxu0 }
 0x134   : > { %v798_v33 = vpop.permute.xlu0 %797 }
 0x135   : > { %v3775_v1 = vpop.f32.mrf.mxu0 }
 0x136   : > { %v1277_v12 = vadd.f32 %v3775_v1, %v1180_v3  ;;  %v3714_v3 = vpop.f32.mrf.mxu1  ;;  %v813_v19 = vpop.permute.xlu1 %812 }
 0x137   : > { %v1268_v63 = vpop.f32.mrf.mxu0 }
 0x138   : > { %v1269_v40 = vadd.f32 %v1268_v63, %v1172_v60  ;;  %v1333_v23 = vmax.f32 %v1277_v12, 0.0  ;;  %v3715_v8 = vpop.f32.mrf.mxu1 }
 0x139   : > { %v3776_v5 = vpop.f32.mrf.mxu0 }
 0x13a   : > { %v1280_v62 = vadd.f32 %v3776_v5, %v1183_v7  ;;  %v1331_v13 = vmax.f32 %v1269_v40, 0.0  ;;  %v5275_v7 = vld [vmem:[#allocation5_spill] sm:$0xff]  ;;  %v5277_v40 = vld [vmem:[#allocation3_spill] sm:$0xff] }
 0x13b   : > { %v1271_v44 = vpop.f32.mrf.mxu0  ;;  %v3701_v2 = vadd.f32 %v5275_v7, %v5274_v32 }
 0x13c   : > { %v1272_v20 = vadd.f32 %v1271_v44, %v1175_v0  ;;  %v1334_v14 = vmax.f32 %v1280_v62, 0.0  ;;  %v3698_v62 = vadd.f32 %v5277_v40, %v5276_v29  ;;  %v1204_v44 = vadd.f32 %v3695_v38, %v1107_v61  ;;  %v1521_v29 = vld [vmem:[%s551_s23 + $0x20] sm:$0xff]  ;;  %v1522_v40 = vld [vmem:[%s551_s23 + $0x28] sm:$0xff] }
 0x13d   : > { %v3779_v16 = vpop.f32.mrf.mxu0  ;;  %v1212_v51 = vadd.f32 %v3701_v2, %v1115_v30  ;;  %v3710_v61 = vadd.f32 %v4473_v9, %v4465_v59 }
 0x13e   : > { %v1332_v52 = vmax.f32 %v1272_v20, 0.0  ;;  %v1350_v15 = vpack.c.bf16 %v1334_v14, %v1333_v23  ;;  %v1293_v41 = vadd.f32 %v3779_v16, %v1196_v17  ;;  %v3652_v20 = vadd.f32 %v4459_v48, %v4457_v45  ;;  %v5280_v14 = vld [vmem:[#allocation12_spill] sm:$0xff] }
 0x13f   : > { %v1284_v25 = vpop.f32.mrf.mxu0  ;;  %v3649_v16 = vadd.f32 %v4453_v54, %v5280_v14  ;;  %v1207_v39 = vadd.f32 %v3698_v62, %v1110_v27  ;;  %v808_v54 = vpop.permute.xlu0 %807  ;;  %v1525_v62 = vpack.c.bf16 %v1522_v40, %v1521_v29  ;;  %v3940_v14 = vld [vmem:[%s5247_s5 + $0x20] sm:$0xff]   ;;  %v1359_v40 = vld [vmem:[%s5254_s12 + $0x10] sm:$0xff] }
 0x140   : > { %v1349_v21 = vpack.c.bf16 %v1332_v52, %v1331_v13  ;;  %v1285_v28 = vadd.f32 %v1284_v25, %v1188_v53  ;;  %v1337_v12 = vmax.f32 %v1293_v41, 0.0  ;;  %v5281_v13 = vld [vmem:[#allocation9_spill] sm:$0xff]  ;;  %v5282_v52 = vld [vmem:[#allocation10_spill] sm:$0xff]  ;;  %v1134_v50 = vadd.f32 %v3652_v20, %v813_v19 }
 0x141   : > { %v3780_v57 = vpop.f32.mrf.mxu0  ;;  %v3646_v31 = vadd.f32 %v5282_v52, %v5281_v13  ;;  %3839 = vmatprep.subr.bf16.mxu1 %v1525_v62  ;;  %v3933_v20 = vld [vmem:[%s5248_s6] sm:$0xff]  }
 0x142   : > { %v1296_v1 = vadd.f32 %v3780_v57, %v1199_v55  ;;  %3791 = vmatprep.mubr.msk.bf16.mxu1 %vm1379_vm1, %v1349_v21  ;;  %v1335_v0 = vmax.f32 %v1285_v28, 0.0  ;;  %v5283_v21 = vld [vmem:[#allocation11_spill] sm:$0xff]  ;;  %v1123_v55 = vadd.f32 %v3643_v18, %v798_v33  ;;  %v1131_v57 = vadd.f32 %v3649_v16, %v808_v54  ;;  %3823 = vmatprep.mubr.bf16.mxu0 %v3933_v20  ;;  %v3949_v20 = vld [vmem:[%s5255_s13 + $0x34] ss:$8 sps:$4 sm:$0xff]  }
 0x143   : > { %v1287_v63 = vpop.f32.mrf.mxu0  ;;  %3792 = vmatmul.mubr.msk.bf16.vlgmr.msra.gmra.mxu1 %vm1379_vm1, %v1350_v15  ;;  %v3707_v45 = vadd.f32 %v4455_v43, %v5283_v21  ;;  %v3716_v15 = vadd.f32 %v3715_v8, %v3714_v3  ;;  %v3932_v18 = vld [vmem:[%s5247_s5 + $0x8] sm:$0xff]   ;;  %v3944_v8 = vld [vmem:[%s5247_s5 + $0x30] sm:$0xff]  }
 0x144   : > { %v1288_v60 = vadd.f32 %v1287_v63, %v1191_v4  ;;  %v1338_v5 = vmax.f32 %v1296_v1, 0.0  ;;  %v1126_v4 = vadd.f32 %v3646_v31, %v803_v34  ;;  %v1228_v30 = vadd.f32 %v3713_v26, %v1131_v57  ;;  %3840 = vmatpush3.bf16.msra.mxu1 %v1525_v62  ;;  %v3942_v16 = vld [vmem:[%s5247_s5 + $0x28] sm:$0xff]  }
 0x145   : > { %v3783_v37 = vpop.f32.mrf.mxu0  ;;  %v1220_v6 = vadd.f32 %v3707_v45, %v1123_v55  ;;  %v1231_v58 = vadd.f32 %v3716_v15, %v1134_v50  ;;  %v1371_v55 = vld [vmem:[%s5254_s12 + $0x70] sm:$0xff]  ;;  %v1372_v15 = vld [vmem:[%s5254_s12 + $0x78] sm:$0xff]  ;;  %v1370_v26 = vld [vmem:[%s5254_s12 + $0x68] sm:$0xff] }
 0x146   : > { %v1336_v10 = vmax.f32 %v1288_v60, 0.0  ;;  %v1352_v49 = vpack.c.bf16 %v1338_v5, %v1337_v12  ;;  %v1309_v48 = vadd.f32 %v3783_v37, %v1212_v51  ;;  %v1223_v47 = vadd.f32 %v3710_v61, %v1126_v4  ;;  %v1368_v4 = vld [vmem:[%s5254_s12 + $0x58] sm:$0xff] }
 0x147   : > { %v1300_v22 = vpop.f32.mrf.mxu0  ;;  %v5284_v51 = vmov 0  }
 0x148   : > { %v1351_v35 = vpack.c.bf16 %v1336_v10, %v1335_v0  ;;  %v1301_v23 = vadd.f32 %v1300_v22, %v1204_v44  ;;  %v1341_v41 = vmax.f32 %v1309_v48, 0.0  ;;  %v1519_v0 = vld [vmem:[%s551_s23 + $0x10] sm:$0xff]  ;;  %v1520_v10 = vld [vmem:[%s551_s23 + $0x18] sm:$0xff]  ;;  %v1517_v44 = vld [vmem:[%s551_s23] sm:$0xff] }
 0x149   : > { %v3784_v11 = vpop.f32.mrf.mxu0  ;;  %v1524_v12 = vpack.c.bf16 %v1520_v10, %v1519_v0  ;;  %v1518_v22 = vld [vmem:[%s551_s23 + $0x8] sm:$0xff] }
 0x14a   : > { %v1312_v25 = vadd.f32 %v3784_v11, %v1215_v46  ;;  %3795 = vmatprep.mubr.msk.bf16.mxu1 %vm1379_vm1, %v1351_v35  ;;  %v1339_v38 = vmax.f32 %v1301_v23, 0.0  ;;  %v1523_v42 = vpack.c.bf16 %v1518_v22, %v1517_v44  ;;  %v3936_v35 = vld [vmem:[%s5247_s5 + $0x10] sm:$0xff]   ;;  %v3938_v46 = vld [vmem:[%s5247_s5 + $0x18] sm:$0xff]   ;;  %v1358_v10 = vld [vmem:[%s5254_s12 + $0x8] sm:$0xff] }
 0x14b   : > { %v1303_v53 = vpop.f32.mrf.mxu0  ;;  %3796 = vmatmul.mubr.msk.bf16.gmra.mxu1 %vm1379_vm1, %v1352_v49  ;;  %3841 = vmatprep.subr.bf16.mxu1 %v1524_v12  ;;  %v3946_v49 = vld [vmem:[%s5247_s5 + $0x38] sm:$0xff]   ;;  %v1357_v44 = vld [vmem:[%s5254_s12] sm:$0xff] }
 0x14c   : > { %v1304_v17 = vadd.f32 %v1303_v53, %v1207_v39  ;;  %v1342_v28 = vmax.f32 %v1312_v25, 0.0  ;;  %3842 = vmatpush3.bf16.msra.mxu1 %v1524_v12 }
 0x14d   : > { %v3787_v1 = vpop.f32.mrf.mxu0  ;;  %3843 = vmatprep.subr.bf16.mxu1 %v1523_v42 }
 0x14e   : > { %v1340_v43 = vmax.f32 %v1304_v17, 0.0  ;;  %v1354_v60 = vpack.c.bf16 %v1342_v28, %v1341_v41  ;;  %v1325_v56 = vadd.f32 %v3787_v1, %v1228_v30  ;;  %v1369_v17 = vld [vmem:[%s5254_s12 + $0x60] sm:$0xff] }
 0x14f   : > { %v1316_v63 = vpop.f32.mrf.mxu0  ;;  %v1365_v30 = vld [vmem:[%s5254_s12 + $0x40] sm:$0xff] }
 0x150   : > { %v1353_v36 = vpack.c.bf16 %v1340_v43, %v1339_v38  ;;  %v1317_v7 = vadd.f32 %v1316_v63, %v1220_v6  ;;  %v1345_v37 = vmax.f32 %v1325_v56, 0.0  ;;  %3844 = vmatpush3.bf16.msra.mxu1 %v1523_v42  ;;  %v1367_v63 = vld [vmem:[%s5254_s12 + $0x50] sm:$0xff] }
 0x151   : > { %v3788_v32 = vpop.f32.mrf.mxu0  ;;  %v1363_v56 = vld [vmem:[%s5254_s12 + $0x30] sm:$0xff] }
 0x152   : > { %v1328_v2 = vadd.f32 %v3788_v32, %v1231_v58  ;;  %3799 = vmatprep.mubr.msk.bf16.mxu1 %vm1379_vm1, %v1353_v36  ;;  %v1343_v3 = vmax.f32 %v1317_v7, 0.0  ;;  %v1366_v58 = vld [vmem:[%s5254_s12 + $0x48] sm:$0xff] }
 0x153   : > { %v1319_v34 = vpop.f32.mrf.mxu0  ;;  %3800 = vmatmul.mubr.msk.bf16.gmra.mxu1 %vm1379_vm1, %v1354_v60 }
 0x154   : > { %v1320_v59 = vadd.f32 %v1319_v34, %v1223_v47  ;;  %v1346_v9 = vmax.f32 %v1328_v2, 0.0  ;;  %v1364_v2 = vld [vmem:[%s5254_s12 + $0x38] sm:$0xff] }
 0x156   : > { %v1344_v5 = vmax.f32 %v1320_v59, 0.0  ;;  %v1356_v27 = vpack.c.bf16 %v1346_v9, %v1345_v37  ;;  %v1362_v9 = vld [vmem:[%s5254_s12 + $0x28] sm:$0xff] }
 0x158   : > { %v1355_v33 = vpack.c.bf16 %v1344_v5, %v1343_v3  ;;  %v1361_v5 = vld [vmem:[%s5254_s12 + $0x20] sm:$0xff] }
 0x15a   : > { %3803 = vmatprep.mubr.msk.bf16.mxu1 %vm1379_vm1, %v1355_v33 }
 0x15b   : > { %3804 = vmatmul.mubr.msk.bf16.gmra.mxu1 %vm1379_vm1, %v1356_v27  ;;  %v1360_v27 = vld [vmem:[%s5254_s12 + $0x18] sm:$0xff] }
 0x15c   : > { %3845 = vmatprep.mubr.msk.bf16.mxu1 %vm1735_vm2, %v3931_v24 }
 0x163   : > { %3846 = vmatmul.mubr.msk.bf16.vlgmr.msra.gmra.mxu1 %vm1735_vm2, %v3932_v18 }
 0x164   : > { %3849 = vmatprep.mubr.msk.bf16.mxu1 %vm1735_vm2, %v3936_v35  ;;  %v3934_v35 = vld [vmem:[%s5248_s6 + $0x8] sm:$0xff]  }
 0x16b   : > { %3850 = vmatmul.mubr.msk.bf16.gmra.mxu1 %vm1735_vm2, %v3938_v46  ;;  %v3935_v46 = vld [vmem:[%s5248_s6 + $0x10] sm:$0xff]  }
 0x16c   : > { %3853 = vmatprep.mubr.msk.bf16.mxu1 %vm1735_vm2, %v3940_v14  ;;  %v3947_v14 = vld [vmem:[%s5255_s13 + $0x30] ss:$8 sps:$4 sm:$0xff]  }
 0x173   : > { %3854 = vmatmul.mubr.msk.bf16.gmra.mxu1 %vm1735_vm2, %v3942_v16  ;;  %v3952_v16 = vld [vmem:[%s5255_s13 + $0x24] ss:$8 sps:$4 sm:$0xff]  }
 0x174   : > { %3857 = vmatprep.mubr.msk.bf16.mxu1 %vm1735_vm2, %v3944_v8  ;;  %v3950_v8 = vld [vmem:[%s5255_s13 + $0x20] ss:$8 sps:$4 sm:$0xff]  }
 0x17b   : > { %3858 = vmatmul.mubr.msk.bf16.gmra.mxu1 %vm1735_vm2, %v3946_v49  ;;  %v3955_v49 = vld [vmem:[%s5255_s13 + $0x14] ss:$8 sps:$4 sm:$0xff]  }
 0x17c   : > { %2266 = vmatprep.mubr.bf16.mxu1 %v5284_v51 }
 0x203   : > { %v3793_v11 = vpop.f32.mrf.mxu1 }
 0x204   : > { %v1447_v12 = vadd.f32 %v3793_v11, %v1359_v40  ;;  %v3937_v11 = vld [vmem:[%s5248_s6 + $0x18] sm:$0xff]  }
 0x205   : > { %v4565_v13 = vpop.f32.mrf.mxu1 }
 0x206   : > { %v1439_v24 = vadd.f32 %v4565_v13, %v1357_v44  ;;  %v3939_v13 = vld [vmem:[%s5248_s6 + $0x20] sm:$0xff]  }
 0x207   : > { %v3794_v52 = vpop.f32.mrf.mxu1 }
 0x208   : > { %v1450_v62 = vadd.f32 %v3794_v52, %v1360_v27  ;;  %v3953_v52 = vld [vmem:[%s5255_s13 + $0x10] ss:$8 sps:$4 sm:$0xff]  }
 0x209   : > { %v1441_v31 = vpop.f32.mrf.mxu1 }
 0x20a   : > { %v1543_v22 = vpack.c.bf16 %v1450_v62, %v1447_v12  ;;  %v1442_v42 = vadd.f32 %v1441_v31, %v1358_v10  ;;  %v3941_v31 = vld [vmem:[%s5248_s6 + $0x28] sm:$0xff]  }
 0x20b   : > { %v3797_v23 = vpop.f32.mrf.mxu1 }
 0x20c   : > { %v1463_v3 = vadd.f32 %v3797_v23, %v1363_v56  ;;  %v1542_v18 = vpack.c.bf16 %v1442_v42, %v1439_v24  ;;  %v3943_v23 = vld [vmem:[%s5248_s6 + $0x30] sm:$0xff]  }
 0x20d   : > { %v1454_v25 = vpop.f32.mrf.mxu1 }
 0x20e   : > { %v1455_v29 = vadd.f32 %v1454_v25, %v1361_v5  ;;  %v3945_v25 = vld [vmem:[%s5248_s6 + $0x38] sm:$0xff]  }
 0x20f   : > { %v3798_v39 = vpop.f32.mrf.mxu1 }
 0x210   : > { %v1466_v34 = vadd.f32 %v3798_v39, %v1364_v2  ;;  %v3958_v39 = vld [vmem:[%s5255_s13 + $0x4] ss:$8 sps:$4 sm:$0xff]  }
 0x211   : > { %v1457_v19 = vpop.f32.mrf.mxu1 }
 0x212   : > { %v1545_v37 = vpack.c.bf16 %v1466_v34, %v1463_v3  ;;  %v1458_v33 = vadd.f32 %v1457_v19, %v1362_v9  ;;  %v3956_v19 = vld [vmem:[%s5255_s13] ss:$8 sps:$4 sm:$0xff]  }
 0x213   : > { %v3801_v21 = vpop.f32.mrf.mxu1 }
 0x214   : > { %v1479_v60 = vadd.f32 %v3801_v21, %v1367_v63  ;;  %v1544_v0 = vpack.c.bf16 %v1458_v33, %v1455_v29 }
 0x215   : > { %v1470_v45 = vpop.f32.mrf.mxu1 }
 0x216   : > { %v1471_v47 = vadd.f32 %v1470_v45, %v1365_v30 }
 0x217   : > { %v3802_v48 = vpop.f32.mrf.mxu1 }
 0x218   : > { %v1482_v36 = vadd.f32 %v3802_v48, %v1368_v4 }
 0x219   : > { %v1473_v53 = vpop.f32.mrf.mxu1 }
 0x21a   : > { %v1547_v32 = vpack.c.bf16 %v1482_v36, %v1479_v60  ;;  %v1474_v7 = vadd.f32 %v1473_v53, %v1366_v58 }
 0x21b   : > { %v3805_v54 = vpop.f32.mrf.mxu1 }
 0x21c   : > { %v1495_v28 = vadd.f32 %v3805_v54, %v1371_v55  ;;  %v1546_v59 = vpack.c.bf16 %v1474_v7, %v1471_v47 }
 0x21d   : > { %v1486_v50 = vpop.f32.mrf.mxu1 }
 0x21e   : > { %v1487_v38 = vadd.f32 %v1486_v50, %v1369_v17 }
 0x21f   : > { %v3806_v57 = vpop.f32.mrf.mxu1 }
 0x220   : > { %v1498_v1 = vadd.f32 %v3806_v57, %v1372_v15  ;;  %v1876_v57 = vpop.permute.xlu0 %1875 }
 0x221   : > { %v1489_v61 = vpop.f32.mrf.mxu1 }
 0x222   : > { %v1549_v43 = vpack.c.bf16 %v1498_v1, %v1495_v28  ;;  %v1490_v41 = vadd.f32 %v1489_v61, %v1370_v26  ;;  %v1881_v26 = vpop.permute.xlu1 %1880 }
 0x223   : > { %v3847_v21 = vpop.f32.mrf.mxu1 }
 0x224   : > { %v1548_v6 = vpack.c.bf16 %v1490_v41, %v1487_v38  ;;  %3807 = vmatprep.subr.bf16.mxu0 %v1549_v43  ;;  %v1886_v7 = vpop.permute.xlu0 %1885 }
 0x225   : > { %3808 = vmatpush3.bf16.msra.mxu0 %v1549_v43  ;;  %v1794_v45 = vpop.f32.mrf.mxu1 }
 0x226   : > { %3809 = vmatprep.subr.bf16.mxu0 %v1548_v6  ;;  %v1891_v30 = vpop.permute.xlu1 %1890 }
 0x227   : > { %v3848_v48 = vpop.f32.mrf.mxu1 }
 0x228   : > { %v1896_v40 = vpop.permute.xlu0 %1895 }
 0x229   : > { %3810 = vmatpush3.bf16.msra.mxu0 %v1548_v6  ;;  %v1797_v54 = vpop.f32.mrf.mxu1 }
 0x22a   : > { %3811 = vmatprep.subr.bf16.mxu0 %v1547_v32  ;;  %v1901_v29 = vpop.permute.xlu1 %1900 }
 0x22b   : > { %v3851_v50 = vpop.f32.mrf.mxu1 }
 0x22d   : > { %3812 = vmatpush3.bf16.msra.mxu0 %v1547_v32  ;;  %v1810_v1 = vpop.f32.mrf.mxu1 }
 0x22e   : > { %3813 = vmatprep.subr.bf16.mxu0 %v1546_v59 }
 0x22f   : > { %v3852_v36 = vpop.f32.mrf.mxu1 }
 0x231   : > { %3814 = vmatpush3.bf16.msra.mxu0 %v1546_v59  ;;  %v1813_v34 = vpop.f32.mrf.mxu1 }
 0x232   : > { %3815 = vmatprep.subr.bf16.mxu0 %v1545_v37 }
 0x235   : > { %3816 = vmatpush3.bf16.msra.mxu0 %v1545_v37  ;;  %v3855_v37 = vpop.f32.mrf.mxu1 }
 0x236   : > { %3817 = vmatprep.subr.bf16.mxu0 %v1544_v0 }
 0x237   : > { %v1826_v12 = vpop.f32.mrf.mxu1 }
 0x239   : > { %3818 = vmatpush3.bf16.msra.mxu0 %v1544_v0 }
 0x23a   : > { %3819 = vmatprep.subr.bf16.mxu0 %v1543_v22 }
 0x23d   : > { %3820 = vmatpush3.bf16.msra.mxu0 %v1543_v22 }
 0x23e   : > { %3821 = vmatprep.subr.bf16.mxu0 %v1542_v18 }
 0x241   : > { %3822 = vmatpush3.bf16.msra.mxu0 %v1542_v18  ;;  %v3856_v18 = vpop.f32.mrf.mxu1 }
 0x242   : > { %2105 = vmatprep.subr.bf16.mxu0 %v3949_v20 }
 0x244   : > { %3824 = vmatmul.mubr.bf16.vlgmr.msra.gmra.mxu0 %v3934_v35 }
 0x245   : > { %3827 = vmatprep.mubr.bf16.mxu0 %v3935_v46  ;;  %2106 = vmatpush1.bf16.msra.mxu0 %v3947_v14  ;;  %v1911_v46 = vpop.permute.xlu1 %1910  ;;  %v1906_v14 = vpop.permute.xlu0 %1905 }
 0x246   : > { %2107 = vmatprep.subr.bf16.mxu0 %v3952_v16 }
 0x249   : > { %2108 = vmatpush1.bf16.msra.mxu0 %v3950_v8 }
 0x24a   : > { %2109 = vmatprep.subr.bf16.mxu0 %v3955_v49 }
 0x24c   : > { %3828 = vmatmul.mubr.bf16.gmra.mxu0 %v3937_v11  ;;  %v1829_v11 = vpop.f32.mrf.mxu1 }
 0x24d   : > { %3831 = vmatprep.mubr.bf16.mxu0 %v3939_v13  ;;  %2110 = vmatpush1.bf16.msra.mxu0 %v3953_v52 }
 0x24e   : > { %2111 = vmatprep.subr.bf16.mxu0 %v3958_v39 }
 0x251   : > { %2112 = vmatpush1.bf16.msra.mxu0 %v3956_v19 }
 0x254   : > { %3832 = vmatmul.mubr.bf16.gmra.mxu0 %v3941_v31 }
 0x255   : > { %3835 = vmatprep.mubr.bf16.mxu0 %v3943_v23 }
 0x25c   : > { %3836 = vmatmul.mubr.bf16.gmra.mxu0 %v3945_v25  ;;  %v3859_v25 = vpop.f32.mrf.mxu1 }
 0x25d   : > { %2129 = vmatprep.mubr.bf16.mxu0 %v5284_v51 }
 0x304   : > { %v3825_v53 = vpop.f32.mrf.mxu0 }
 0x305   : > { %v1803_v6 = vadd.f32 %v3847_v21, %v3825_v53  ;;  %v1921_v21 = vpop.permute.xlu1 %1920 }
 0x306   : > { %v1632_v55 = vpop.f32.mrf.mxu0 }
 0x307   : > { %v1795_v15 = vadd.f32 %v1794_v45, %v1632_v55  ;;  %v1955_v59 = vadd.f32 %v1886_v7, %v1803_v6  ;;  %v1916_v45 = vpop.permute.xlu0 %1915  ;;  %v1842_v55 = vpop.f32.mrf.mxu1 }
 0x308   : > { %v3826_v17 = vpop.f32.mrf.mxu0 }
 0x309   : > { %v1953_v4 = vadd.f32 %v1876_v57, %v1795_v15  ;;  %v1806_v43 = vadd.f32 %v3848_v48, %v3826_v17  ;;  %v1971_v33 = vmax.f32 %v1955_v59, 0.0 }
 0x30a   : > { %v1635_v28 = vpop.f32.mrf.mxu0 }
 0x30b   : > { %v1798_v61 = vadd.f32 %v1797_v54, %v1635_v28  ;;  %v1969_v58 = vmax.f32 %v1953_v4, 0.0  ;;  %v1956_v2 = vadd.f32 %v1891_v30, %v1806_v43  ;;  %v1931_v4 = vpop.permute.xlu1 %1930 }
 0x30c   : > { %v3829_v38 = vpop.f32.mrf.mxu0 }
 0x30d   : > { %v1954_v41 = vadd.f32 %v1881_v26, %v1798_v61  ;;  %v1972_v9 = vmax.f32 %v1956_v2, 0.0  ;;  %v1819_v20 = vadd.f32 %v3851_v50, %v3829_v38  ;;  %v3860_v26 = vpop.f32.mrf.mxu1  ;;  %v1926_v61 = vpop.permute.xlu0 %1925 }
 0x30e   : > { %v1648_v63 = vpop.f32.mrf.mxu0 }
 0x30f   : > { %v1970_v60 = vmax.f32 %v1954_v41, 0.0  ;;  %v1811_v27 = vadd.f32 %v1810_v1, %v1648_v63  ;;  %v1994_v62 = vpack.c.bf16 %v1972_v9, %v1971_v33  ;;  %v1959_v13 = vadd.f32 %v1906_v14, %v1819_v20  ;;  %v1845_v63 = vpop.f32.mrf.mxu1 }
 0x310   : > { %v3830_v32 = vpop.f32.mrf.mxu0 }
 0x311   : > { %v1993_v47 = vpack.c.bf16 %v1970_v60, %v1969_v58  ;;  %v1957_v44 = vadd.f32 %v1896_v40, %v1811_v27  ;;  %v1822_v22 = vadd.f32 %v3852_v36, %v3830_v32  ;;  %v1975_v39 = vmax.f32 %v1959_v13, 0.0  ;;  %v1941_v32 = vpop.permute.xlu1 %1940 }
 0x312   : > { %v1651_v56 = vpop.f32.mrf.mxu0 }
 0x313   : > { %3448 = vmatmul.mubr.msk.bf16.vlgmr.msra.gmra.mxu0 %vm1015_vm0, %v1993_v47  ;;  %v1814_v3 = vadd.f32 %v1813_v34, %v1651_v56  ;;  %v1973_v35 = vmax.f32 %v1957_v44, 0.0  ;;  %v1960_v16 = vadd.f32 %v1911_v46, %v1822_v22  ;;  %v1936_v47 = vpop.permute.xlu0 %1935  ;;  %v2371_v46 = vld [vmem:[%s5257_s15 + $0x160] sm:$0xff] }
 0x314   : > { %2139 = vmatprep.mubr.bf16.mxu0 %v5284_v51  ;;  %v3833_v5 = vpop.f32.mrf.mxu0 }
 0x315   : > { %v1958_v0 = vadd.f32 %v1901_v29, %v1814_v3  ;;  %v1976_v52 = vmax.f32 %v1960_v16, 0.0  ;;  %v1835_v28 = vadd.f32 %v3855_v37, %v3833_v5  ;;  %v1951_v5 = vpop.permute.xlu1 %1950 }
 0x316   : > { %v1664_v10 = vpop.f32.mrf.mxu0 }
 0x317   : > { %v1974_v42 = vmax.f32 %v1958_v0, 0.0  ;;  %v1827_v19 = vadd.f32 %v1826_v12, %v1664_v10  ;;  %v1996_v48 = vpack.c.bf16 %v1976_v52, %v1975_v39  ;;  %v1963_v36 = vadd.f32 %v1926_v61, %v1835_v28  ;;  %v1946_v27 = vpop.permute.xlu0 %1945  ;;  %v2383_v10 = vld [vmem:[%s5257_s15 + $0x1c0] sm:$0xff] }
 0x318   : > { %v3834_v24 = vpop.f32.mrf.mxu0  ;;  %v2387_v12 = vld [vmem:[%s5257_s15 + $0x1e0] sm:$0xff] }
 0x319   : > { %v1995_v8 = vpack.c.bf16 %v1974_v42, %v1973_v35  ;;  %v1961_v50 = vadd.f32 %v1916_v45, %v1827_v19  ;;  %v1838_v15 = vadd.f32 %v3856_v18, %v3834_v24  ;;  %v1979_v60 = vmax.f32 %v1963_v36, 0.0  ;;  %v2375_v42 = vld [vmem:[%s5257_s15 + $0x180] sm:$0xff] }
 0x31a   : > { %v1667_v49 = vpop.f32.mrf.mxu0  ;;  %v3513_v44 = vcombine.low %v2383_v10, %v2387_v12  ;;  %v3514_v22 = vcombine.high %v2383_v10, %v2387_v12  ;;  %v2379_v24 = vld [vmem:[%s5257_s15 + $0x1a0] sm:$0xff] }
 0x31b   : > { %3449 = vmatmul.mubr.msk.bf16.gmra.mxu0 %vm1015_vm0, %v1994_v62  ;;  %v1830_v31 = vadd.f32 %v1829_v11, %v1667_v49  ;;  %v1977_v1 = vmax.f32 %v1961_v50, 0.0  ;;  %v1964_v38 = vadd.f32 %v1931_v4, %v1838_v15  ;;  %v3506_v18 = vcombine.high %v2375_v42, %v2379_v24  ;;  %v2367_v35 = vld [vmem:[%s5257_s15 + $0x140] sm:$0xff] }
 0x31c   : > { %2149 = vmatprep.mubr.bf16.mxu0 %v5284_v51  ;;  %v3837_v23 = vpop.f32.mrf.mxu0  ;;  %3097 = vmatprep.subr.bf16.mxu0 %v3514_v22  ;;  %v3505_v20 = vcombine.low %v2375_v42, %v2379_v24  ;;  %v3498_v14 = vcombine.high %v2367_v35, %v2371_v46  ;;  %v3497_v16 = vcombine.low %v2367_v35, %v2371_v46  ;;  %v2363_v49 = vld [vmem:[%s5257_s15 + $0x120] sm:$0xff] }
 0x31d   : > { %v1962_v53 = vadd.f32 %v1921_v21, %v1830_v31  ;;  %v1980_v6 = vmax.f32 %v1964_v38, 0.0  ;;  %v1851_v9 = vadd.f32 %v3859_v25, %v3837_v23  ;;  %3098 = vmatpush1.bf16.msra.mxu0 %v3513_v44  ;;  %v2351_v52 = vld [vmem:[%s5257_s15 + $0xc0] sm:$0xff] }
 0x31e   : > { %v1680_v54 = vpop.f32.mrf.mxu0  ;;  %3099 = vmatprep.subr.bf16.mxu0 %v3506_v18  ;;  %v2355_v31 = vld [vmem:[%s5257_s15 + $0xe0] sm:$0xff] }
 0x31f   : > { %v1978_v17 = vmax.f32 %v1962_v53, 0.0  ;;  %v1843_v30 = vadd.f32 %v1842_v55, %v1680_v54  ;;  %v1998_v7 = vpack.c.bf16 %v1980_v6, %v1979_v60  ;;  %v1967_v29 = vadd.f32 %v1946_v27, %v1851_v9  ;;  %v2343_v39 = vld [vmem:[%s5257_s15 + $0x80] sm:$0xff]  ;;  %v2006_v9 = vld [vmem:[%s5256_s14 + $0x28] sm:$0xff] }
 0x320   : > { %v3838_v57 = vpop.f32.mrf.mxu0  ;;  %v3482_v23 = vcombine.high %v2351_v52, %v2355_v31  ;;  %v3481_v25 = vcombine.low %v2351_v52, %v2355_v31  ;;  %v2347_v19 = vld [vmem:[%s5257_s15 + $0xa0] sm:$0xff] }
 0x321   : > { %v1997_v43 = vpack.c.bf16 %v1978_v17, %v1977_v1  ;;  %v1965_v56 = vadd.f32 %v1936_v47, %v1843_v30  ;;  %v1854_v34 = vadd.f32 %v3860_v26, %v3838_v57  ;;  %v1983_v62 = vmax.f32 %v1967_v29, 0.0  ;;  %3100 = vmatpush1.bf16.msra.mxu0 %v3505_v20  ;;  %v2335_v53 = vld [vmem:[%s5257_s15 + $0x40] sm:$0xff]  ;;  %v2003_v17 = vld [vmem:[%s5256_s14 + $0x10] sm:$0xff]  ;;  %v2002_v57 = vld [vmem:[%s5256_s14 + $0x8] sm:$0xff] }
 0x322   : > { %v1683_v41 = vpop.f32.mrf.mxu0  ;;  %3101 = vmatprep.subr.bf16.mxu0 %v3498_v14  ;;  %v3474_v21 = vcombine.high %v2343_v39, %v2347_v19  ;;  %v3473_v45 = vcombine.low %v2343_v39, %v2347_v19  ;;  %v2339_v54 = vld [vmem:[%s5257_s15 + $0x60] sm:$0xff]  ;;  %v2004_v1 = vld [vmem:[%s5256_s14 + $0x18] sm:$0xff] }
 0x323   : > { %3450 = vmatmul.mubr.msk.bf16.gmra.mxu0 %vm1015_vm0, %v1995_v8  ;;  %v1846_v58 = vadd.f32 %v1845_v63, %v1683_v41  ;;  %v1981_v3 = vmax.f32 %v1965_v56, 0.0  ;;  %v1968_v37 = vadd.f32 %v1951_v5, %v1854_v34  ;;  %v2359_v8 = vld [vmem:[%s5257_s15 + $0x100] sm:$0xff]  ;;  %v3466_v55 = vcombine.high %v2335_v53, %v2339_v54 }
 0x324   : > { %2159 = vmatprep.mubr.bf16.mxu0 %v5284_v51  ;;  %v3490_v11 = vcombine.high %v2359_v8, %v2363_v49  ;;  %v3489_v13 = vcombine.low %v2359_v8, %v2363_v49  ;;  %v2001_v50 = vld [vmem:[%s5256_s14] sm:$0xff]  ;;  %v3465_v26 = vcombine.low %v2335_v53, %v2339_v54 }
 0x325   : > { %v1966_v2 = vadd.f32 %v1941_v32, %v1846_v58  ;;  %v1984_v40 = vmax.f32 %v1968_v37, 0.0  ;;  %3102 = vmatpush1.bf16.msra.mxu0 %v3497_v16  ;;  %v2327_v4 = vld [vmem:[%s5257_s15] sm:$0xff]  ;;  %v2008_v37 = vld [vmem:[%s5256_s14 + $0x38] sm:$0xff] }
 0x326   : > { %3103 = vmatprep.subr.bf16.mxu0 %v3490_v11  ;;  %v2331_v61 = vld [vmem:[%s5257_s15 + $0x20] sm:$0xff] }
 0x327   : > { %v1982_v59 = vmax.f32 %v1966_v2, 0.0  ;;  %v2000_v0 = vpack.c.bf16 %v1984_v40, %v1983_v62  ;;  %v3458_v41 = vcombine.high %v2327_v4, %v2331_v61  ;;  %v3457_v60 = vcombine.low %v2327_v4, %v2331_v61  ;;  %v2447_v32 = vld [vmem:[%s5257_s15 + $0x3c0] sm:$0xff]  ;;  %v2031_v4 = vld [vmem:[%s5256_s14 + $0xf0] sm:$0xff]  ;;  %v2028_v61 = vld [vmem:[%s5256_s14 + $0xd8] sm:$0xff] }
 0x328   : > { %v2005_v56 = vld [vmem:[%s5256_s14 + $0x20] sm:$0xff] }
 0x329   : > { %v1999_v33 = vpack.c.bf16 %v1982_v59, %v1981_v3  ;;  %3104 = vmatpush1.bf16.msra.mxu0 %v3489_v13  ;;  %v2007_v59 = vld [vmem:[%s5256_s14 + $0x30] sm:$0xff]  ;;  %v2443_v27 = vld [vmem:[%s5257_s15 + $0x3a0] sm:$0xff] }
 0x32a   : > { %3105 = vmatprep.subr.bf16.mxu0 %v3482_v23  ;;  %v2431_v24 = vld [vmem:[%s5257_s15 + $0x340] sm:$0xff] }
 0x32b   : > { %3451 = vmatmul.mubr.msk.bf16.gmra.mxu0 %vm1015_vm0, %v1996_v48  ;;  %v2435_v18 = vld [vmem:[%s5257_s15 + $0x360] sm:$0xff] }
 0x32c   : > { %2169 = vmatprep.mubr.bf16.mxu0 %v5284_v51  ;;  %v3562_v35 = vcombine.high %v2431_v24, %v2435_v18  ;;  %v3561_v14 = vcombine.low %v2431_v24, %v2435_v18  ;;  %v2423_v8 = vld [vmem:[%s5257_s15 + $0x300] sm:$0xff]  ;;  %v2023_v24 = vld [vmem:[%s5256_s14 + $0xb0] sm:$0xff] }
 0x32d   : > { %3106 = vmatpush1.bf16.msra.mxu0 %v3481_v25  ;;  %v2427_v49 = vld [vmem:[%s5257_s15 + $0x320] sm:$0xff] }
 0x32e   : > { %3107 = vmatprep.subr.bf16.mxu0 %v3474_v21  ;;  %v3554_v11 = vcombine.high %v2423_v8, %v2427_v49  ;;  %v3553_v52 = vcombine.low %v2423_v8, %v2427_v49  ;;  %v2021_v49 = vld [vmem:[%s5256_s14 + $0xa0] sm:$0xff] }
 0x331   : > { %3108 = vmatpush1.bf16.msra.mxu0 %v3473_v45 }
 0x332   : > { %3109 = vmatprep.subr.bf16.mxu0 %v3466_v55 }
 0x333   : > { %3452 = vmatmul.mubr.msk.bf16.gmra.mxu0 %vm1015_vm0, %v1997_v43 }
 0x334   : > { %2179 = vmatprep.mubr.bf16.mxu0 %v5284_v51 }
 0x335   : > { %3110 = vmatpush1.bf16.msra.mxu0 %v3465_v26 }
 0x336   : > { %3111 = vmatprep.subr.bf16.mxu0 %v3458_v41  ;;  %v2030_v41 = vld [vmem:[%s5256_s14 + $0xe8] sm:$0xff] }
 0x339   : > { %3112 = vmatpush1.bf16.msra.mxu0 %v3457_v60  ;;  %v2032_v60 = vld [vmem:[%s5256_s14 + $0xf8] sm:$0xff] }
 0x33b   : > { %3453 = vmatmul.mubr.msk.bf16.gmra.mxu0 %vm1015_vm0, %v1998_v7  ;;  %v2451_v7 = vld [vmem:[%s5257_s15 + $0x3e0] sm:$0xff] }
 0x33c   : > { %2189 = vmatprep.mubr.bf16.mxu0 %v5284_v51  ;;  %v3578_v47 = vcombine.high %v2447_v32, %v2451_v7  ;;  %v3577_v3 = vcombine.low %v2447_v32, %v2451_v7  ;;  %v2026_v32 = vld [vmem:[%s5256_s14 + $0xc8] sm:$0xff] }
 0x33e   : > { %3113 = vmatprep.subr.bf16.mxu0 %v3578_v47 }
 0x33f   : > { %3114 = vmatpush2.bf16.msra.mxu0 %v3577_v3  ;;  %v2024_v3 = vld [vmem:[%s5256_s14 + $0xb8] sm:$0xff] }
 0x343   : > { %3454 = vmatmul.mubr.msk.bf16.gmra.mxu0 %vm1015_vm0, %v1999_v33  ;;  %v2439_v33 = vld [vmem:[%s5257_s15 + $0x380] sm:$0xff] }
 0x344   : > { %2199 = vmatprep.mubr.bf16.mxu0 %v5284_v51  ;;  %v3570_v62 = vcombine.high %v2439_v33, %v2443_v27  ;;  %v3569_v22 = vcombine.low %v2439_v33, %v2443_v27 }
 0x346   : > { %3115 = vmatprep.subr.bf16.mxu0 %v3570_v62  ;;  %v2022_v62 = vld [vmem:[%s5256_s14 + $0xa8] sm:$0xff] }
 0x347   : > { %3116 = vmatpush2.bf16.msra.mxu0 %v3569_v22 }
 0x348   : > { %3117 = vmatprep.subr.bf16.mxu0 %v3562_v35 }
 0x34b   : > { %3455 = vmatmul.mubr.msk.bf16.gmra.mxu0 %vm1015_vm0, %v2000_v0 }
 0x34c   : > { %3118 = vmatpush2.bf16.msra.mxu0 %v3561_v14  ;;  %v2020_v14 = vld [vmem:[%s5256_s14 + $0x98] sm:$0xff] }
 0x34d   : > { %3119 = vmatprep.subr.bf16.mxu0 %v3554_v11 }
 0x350   : > { %3120 = vmatpush2.bf16.msra.mxu0 %v3553_v52  ;;  %v2018_v52 = vld [vmem:[%s5256_s14 + $0x88] sm:$0xff] }
 0x3d3   : > { %v2131_v48 = vpop.f32.mrf.mxu0 }
 0x3d4   : > { %v4737_v38 = vadd.f32 %v2131_v48, %v2001_v50 }
 0x3d5   : > { %v2133_v15 = vpop.f32.mrf.mxu0 }
 0x3d6   : > { %v4741_v36 = vadd.f32 %v2133_v15, %v2002_v57 }
 0x3d7   : > { %v2135_v28 = vpop.f32.mrf.mxu0 }
 0x3d8   : > { %v4739_v43 = vadd.f32 %v2135_v28, %v2003_v17 }
 0x3d9   : > { %v2137_v63 = vpop.f32.mrf.mxu0 }
 0x3da   : > { %v2218_v6 = vpack.c.bf16 %v4739_v43, %v4737_v38  ;;  %v4745_v58 = vadd.f32 %v2137_v63, %v2004_v1  ;;  %v2380_v38 = vld [vmem:[%s5257_s15 + $0x1a8] sm:$0xff]  ;;  %v2210_v43 = vld [vmem:[%s5250_s8] sm:$0xf] }
 0x3db   : > { %v2141_v30 = vpop.f32.mrf.mxu0 }
 0x3dc   : > { %v2219_v2 = vpack.c.bf16 %v4745_v58, %v4741_v36  ;;  %v4773_v29 = vadd.f32 %v2141_v30, %v2005_v56  ;;  %v2029_v30 = vld [vmem:[%s5256_s14 + $0xe0] sm:$0xff]  ;;  %v2027_v56 = vld [vmem:[%s5256_s14 + $0xd0] sm:$0xff] }
 0x3dd   : > { %v2143_v34 = vpop.f32.mrf.mxu0  ;;  %v2217_v36 = vld [vmem:[%s5251_s9] sm:$0xf] }
 0x3de   : > { %v4777_v10 = vadd.f32 %v2143_v34, %v2006_v9 }
 0x3df   : > { %v2145_v5 = vpop.f32.mrf.mxu0 }
 0x3e0   : > { %v4775_v40 = vadd.f32 %v2145_v5, %v2007_v59 }
 0x3e1   : > { %v2147_v0 = vpop.f32.mrf.mxu0 }
 0x3e2   : > { %v2220_v12 = vpack.c.bf16 %v4775_v40, %v4773_v29  ;;  %v4781_v44 = vadd.f32 %v2147_v0, %v2008_v37  ;;  %v2025_v37 = vld [vmem:[%s5256_s14 + $0xc0] sm:$0xff]  ;;  %v2376_v29 = vld [vmem:[%s5257_s15 + $0x188] sm:$0xff] }
 0x3e3   : > { %v4783_v42 = vpop.f32.mrf.mxu0  ;;  %v3508_v40 = vcombine.high %v2376_v29, %v2380_v38 }
 0x3e4   : > { %v2221_v20 = vpack.c.bf16 %v4781_v44, %v4777_v10  ;;  %v2388_v10 = vld [vmem:[%s5257_s15 + $0x1e8] sm:$0xff]  ;;  %v3507_v44 = vcombine.low %v2376_v29, %v2380_v38 }
 0x3e5   : > { %v4793_v46 = vpop.f32.mrf.mxu0  ;;  %v2400_v29 = vld [vmem:[%s5257_s15 + $0x248] sm:$0xff] }
 0x3e7   : > { %v4795_v16 = vpop.f32.mrf.mxu0 }
 0x3e9   : > { %v4803_v13 = vpop.f32.mrf.mxu0 }
 0x3eb   : > { %v4805_v31 = vpop.f32.mrf.mxu0 }
 0x3ed   : > { %v4807_v23 = vpop.f32.mrf.mxu0 }
 0x3ef   : > { %v4809_v25 = vpop.f32.mrf.mxu0 }
 0x3f1   : > { %v2167_v39 = vpop.f32.mrf.mxu0 }
 0x3f3   : > { %v4811_v19 = vpop.f32.mrf.mxu0 }
 0x3f5   : > { %v2173_v21 = vpop.f32.mrf.mxu0 }
 0x3f7   : > { %v2175_v45 = vpop.f32.mrf.mxu0 }
 0x3f9   : > { %v2177_v48 = vpop.f32.mrf.mxu0 }
 0x3fb   : > { %v2181_v53 = vpop.f32.mrf.mxu0 }
 0x3fd   : > { %v2183_v54 = vpop.f32.mrf.mxu0 }
 0x3fe   : > { %v2184_v11 = vadd.f32 %v2183_v54, %v2022_v62  ;;  %v2017_v54 = vld [vmem:[%s5256_s14 + $0x80] sm:$0xff]  ;;  %v2364_v62 = vld [vmem:[%s5257_s15 + $0x128] sm:$0xff] }
 0x3ff   : > { %v2185_v55 = vpop.f32.mrf.mxu0 }
 0x401   : > { %v2187_v50 = vpop.f32.mrf.mxu0 }
 0x402   : > { %v2188_v18 = vadd.f32 %v2187_v50, %v2024_v3 }
 0x403   : > { %v2191_v15 = vpop.f32.mrf.mxu0 }
 0x404   : > { %v2192_v8 = vadd.f32 %v2191_v15, %v2025_v37  ;;  %v2016_v15 = vld [vmem:[%s5256_s14 + $0x78] sm:$0xff]  ;;  %v2213_v37 = vld [vmem:[%s546_s24 + $0x10] sm:$0xff] }
 0x405   : > { %v2193_v17 = vpop.f32.mrf.mxu0 }
 0x406   : > { %v2194_v33 = vadd.f32 %v2193_v17, %v2026_v32  ;;  %v2186_v17 = vadd.f32 %v2185_v55, %v2023_v24  ;;  %v2014_v55 = vld [vmem:[%s5256_s14 + $0x68] sm:$0xff] }
 0x407   : > { %v2195_v57 = vpop.f32.mrf.mxu0  ;;  %v2010_v32 = vld [vmem:[%s5256_s14 + $0x48] sm:$0xff] }
 0x408   : > { %v2196_v0 = vadd.f32 %v2195_v57, %v2027_v56  ;;  %v2019_v57 = vld [vmem:[%s5256_s14 + $0x90] sm:$0xff]  ;;  %v2352_v24 = vld [vmem:[%s5257_s15 + $0xc8] sm:$0xff] }
 0x409   : > { %v2197_v26 = vpop.f32.mrf.mxu0 }
 0x40a   : > { %v2198_v34 = vadd.f32 %v2197_v26, %v2028_v61  ;;  %v2230_v50 = vpack.c.bf16 %v2196_v0, %v2192_v8  ;;  %v2178_v26 = vadd.f32 %v2177_v48, %v2020_v14  ;;  %v2176_v61 = vadd.f32 %v2175_v45, %v2019_v57  ;;  %v2015_v48 = vld [vmem:[%s5256_s14 + $0x70] sm:$0xff]  ;;  %v2344_v8 = vld [vmem:[%s5257_s15 + $0x88] sm:$0xff] }
 0x40b   : > { %v2201_v28 = vpop.f32.mrf.mxu0  ;;  %v2164_v45 = vadd.f32 %v4807_v23, %v2014_v55  ;;  %v2009_v23 = vld [vmem:[%s5256_s14 + $0x40] sm:$0xff]  ;;  %v2452_v55 = vld [vmem:[%s5257_s15 + $0x3e8] sm:$0xff] }
 0x40c   : > { %v2202_v5 = vadd.f32 %v2201_v28, %v2029_v30  ;;  %v2231_v35 = vpack.c.bf16 %v2198_v34, %v2194_v33  ;;  %v2229_v28 = vpack.c.bf16 %v2188_v18, %v2184_v11  ;;  %v2172_v30 = vadd.f32 %v4811_v19, %v2017_v54  ;;  %v2011_v19 = vld [vmem:[%s5256_s14 + $0x50] sm:$0xff]  ;;  %v2384_v33 = vld [vmem:[%s5257_s15 + $0x1c8] sm:$0xff] }
 0x40d   : > { %v2203_v1 = vpop.f32.mrf.mxu0  ;;  %v2356_v18 = vld [vmem:[%s5257_s15 + $0xe8] sm:$0xff] }
 0x40e   : > { %v2204_v59 = vadd.f32 %v2203_v1, %v2030_v41  ;;  %v2182_v1 = vadd.f32 %v2181_v53, %v2021_v49  ;;  %v2012_v53 = vld [vmem:[%s5256_s14 + $0x58] sm:$0xff]  ;;  %v3484_v14 = vcombine.high %v2352_v24, %v2356_v18  ;;  %v2348_v49 = vld [vmem:[%s5257_s15 + $0xa8] sm:$0xff]  ;;  %v3483_v11 = vcombine.low %v2352_v24, %v2356_v18  ;;  %v2385_v18 = vld [vmem:[%s5257_s15 + $0x1d0] sm:$0xff] }
 0x40f   : > { %v2205_v63 = vpop.f32.mrf.mxu0  ;;  %v3475_v57 = vcombine.low %v2344_v8, %v2348_v49 }
 0x410   : > { %v2206_v7 = vadd.f32 %v2205_v63, %v2031_v4  ;;  %v2174_v4 = vadd.f32 %v2173_v21, %v2018_v52  ;;  %v2228_v41 = vpack.c.bf16 %v2186_v17, %v2182_v1  ;;  %v2168_v63 = vadd.f32 %v2167_v39, %v2016_v15  ;;  %v2013_v21 = vld [vmem:[%s5256_s14 + $0x60] sm:$0xff]  ;;  %v2336_v17 = vld [vmem:[%s5257_s15 + $0x48] sm:$0xff] }
 0x411   : > { %v2207_v47 = vpop.f32.mrf.mxu0  ;;  %v2166_v39 = vadd.f32 %v4809_v25, %v2015_v48  ;;  %v2162_v34 = vadd.f32 %v4805_v31, %v2013_v21  ;;  %v2156_v25 = vadd.f32 %v4795_v16, %v2011_v19  ;;  %v2214_v31 = vld [vmem:[%s546_s24 + $0x18] sm:$0xff]  ;;  %v2211_v16 = vld [vmem:[%s546_s24] sm:$0xff]  ;;  %v3476_v52 = vcombine.high %v2344_v8, %v2348_v49  ;;  %v2332_v15 = vld [vmem:[%s5257_s15 + $0x28] sm:$0xff] }
 0x412   : > { %v2208_v9 = vadd.f32 %v2207_v47, %v2032_v60  ;;  %v2232_v22 = vpack.c.bf16 %v2206_v7, %v2202_v5  ;;  %v2227_v60 = vpack.c.bf16 %v2178_v26, %v2174_v4  ;;  %v2226_v7 = vpack.c.bf16 %v2176_v61, %v2172_v30  ;;  %v2448_v4 = vld [vmem:[%s5257_s15 + $0x3c8] sm:$0xff]  ;;  %v2390_v49 = vld [vmem:[%s5257_s15 + $0x1f8] sm:$0xff] }
 0x413   : > { %v2158_v47 = vadd.f32 %v4803_v13, %v2012_v53  ;;  %v2225_v56 = vpack.c.bf16 %v2168_v63, %v2164_v45  ;;  %v2152_v5 = vadd.f32 %v4783_v42, %v2009_v23  ;;  %v2215_v58 = vpack.c.bf16 %v2213_v37, %v2211_v16  ;;  %v2440_v48 = vld [vmem:[%s5257_s15 + $0x388] sm:$0xff]  ;;  %v2419_v23 = vld [vmem:[%s5257_s15 + $0x2e0] sm:$0xff] }
 0x414   : > { %v2233_v27 = vpack.c.bf16 %v2208_v9, %v2204_v59  ;;  %v2154_v59 = vadd.f32 %v4793_v46, %v2010_v32  ;;  %v2224_v9 = vpack.c.bf16 %v2166_v39, %v2162_v34  ;;  %v2212_v46 = vld [vmem:[%s546_s24 + $0x8] sm:$0xff]  ;;  %v2415_v34 = vld [vmem:[%s5257_s15 + $0x2c0] sm:$0xff] }
 0x415   : > { %v2222_v13 = vpack.c.bf16 %v2156_v25, %v2152_v5  ;;  %v2216_v42 = vpack.c.bf16 %v2214_v31, %v2212_v46  ;;  %v2444_v63 = vld [vmem:[%s5257_s15 + $0x3a8] sm:$0xff]  ;;  %v3546_v25 = vcombine.high %v2415_v34, %v2419_v23  ;;  %v2407_v46 = vld [vmem:[%s5257_s15 + $0x280] sm:$0xff] }
 0x416   : > { %2234 = vmatprep.subr.bf16.mxu1 %v2233_v27  ;;  %v2223_v3 = vpack.c.bf16 %v2158_v47, %v2154_v59  ;;  %v2360_v27 = vld [vmem:[%s5257_s15 + $0x108] sm:$0xff]  ;;  %v3572_v53 = vcombine.high %v2440_v48, %v2444_v63  ;;  %v3571_v45 = vcombine.low %v2440_v48, %v2444_v63  ;;  %v2411_v31 = vld [vmem:[%s5257_s15 + $0x2a0] sm:$0xff]  ;;  %v2377_v63 = vld [vmem:[%s5257_s15 + $0x190] sm:$0xff] }
 0x417   : > { %2235 = vmatpush1.bf16.msra.mxu1 %v2232_v22  ;;  %v3492_v22 = vcombine.high %v2360_v27, %v2364_v62  ;;  %v2432_v30 = vld [vmem:[%s5257_s15 + $0x348] sm:$0xff]  ;;  %3121 = vmatprep.subr.bf16.mxu0 %v3546_v25  ;;  %v3538_v16 = vcombine.high %v2407_v46, %v2411_v31 }
 0x418   : > { %2236 = vmatprep.subr.bf16.mxu1 %v2231_v35  ;;  %v3491_v35 = vcombine.low %v2360_v27, %v2364_v62  ;;  %v2436_v21 = vld [vmem:[%s5257_s15 + $0x368] sm:$0xff] }
 0x419   : > { %v3564_v32 = vcombine.high %v2432_v30, %v2436_v21  ;;  %v2424_v39 = vld [vmem:[%s5257_s15 + $0x308] sm:$0xff]  ;;  %v3563_v19 = vcombine.low %v2432_v30, %v2436_v21  ;;  %v2378_v30 = vld [vmem:[%s5257_s15 + $0x198] sm:$0xff] }
 0x41a   : > { %v2416_v59 = vld [vmem:[%s5257_s15 + $0x2c8] sm:$0xff]  ;;  %v2382_v21 = vld [vmem:[%s5257_s15 + $0x1b8] sm:$0xff] }
 0x41b   : > { %2237 = vmatpush1.bf16.msra.mxu1 %v2230_v50  ;;  %v2340_v50 = vld [vmem:[%s5257_s15 + $0x68] sm:$0xff] }
 0x41c   : > { %2238 = vmatprep.subr.bf16.mxu1 %v2229_v28  ;;  %v3468_v26 = vcombine.high %v2336_v17, %v2340_v50  ;;  %v2328_v28 = vld [vmem:[%s5257_s15 + $0x8] sm:$0xff]  ;;  %v3467_v1 = vcombine.low %v2336_v17, %v2340_v50 }
 0x41d   : > { %v3460_v54 = vcombine.high %v2328_v28, %v2332_v15  ;;  %v3459_v61 = vcombine.low %v2328_v28, %v2332_v15  ;;  %v2412_v37 = vld [vmem:[%s5257_s15 + $0x2a8] sm:$0xff] }
 0x41e   : > { %v2396_v62 = vld [vmem:[%s5257_s15 + $0x228] sm:$0xff] }
 0x41f   : > { %2239 = vmatpush1.bf16.msra.mxu1 %v2228_v41  ;;  %v3580_v41 = vcombine.high %v2448_v4, %v2452_v55 }
 0x420   : > { %2240 = vmatprep.subr.bf16.mxu1 %v2227_v60  ;;  %v3579_v60 = vcombine.low %v2448_v4, %v2452_v55  ;;  %v2323_v4 = vpop.permute.xlu0 %2322 }
 0x423   : > { %2241 = vmatpush1.bf16.msra.mxu1 %v2226_v7  ;;  %v2428_v7 = vld [vmem:[%s5257_s15 + $0x328] sm:$0xff] }
 0x424   : > { %2242 = vmatprep.subr.bf16.mxu1 %v2225_v56  ;;  %v3556_v47 = vcombine.high %v2424_v39, %v2428_v7  ;;  %v3555_v56 = vcombine.low %v2424_v39, %v2428_v7  ;;  %v2369_v39 = vld [vmem:[%s5257_s15 + $0x150] sm:$0xff] }
 0x427   : > { %2243 = vmatpush1.bf16.msra.mxu1 %v2224_v9  ;;  %v2420_v9 = vld [vmem:[%s5257_s15 + $0x2e8] sm:$0xff] }
 0x428   : > { %2244 = vmatprep.subr.bf16.mxu1 %v2223_v3  ;;  %v3545_v3 = vcombine.low %v2415_v34, %v2419_v23  ;;  %v3547_v5 = vcombine.low %v2416_v59, %v2420_v9  ;;  %v2374_v34 = vld [vmem:[%s5257_s15 + $0x178] sm:$0xff] }
 0x42a   : > { %3122 = vmatpush2.bf16.msra.mxu0 %v3545_v3  ;;  %v2361_v3 = vld [vmem:[%s5257_s15 + $0x110] sm:$0xff] }
 0x42b   : > { %2245 = vmatpush1.bf16.msra.mxu1 %v2222_v13  ;;  %v3548_v13 = vcombine.high %v2416_v59, %v2420_v9  ;;  %3123 = vmatprep.subr.bf16.mxu0 %v3538_v16  ;;  %v3511_v59 = vcombine.low %v2378_v30, %v2382_v21 }
 0x42c   : > { %2246 = vmatprep.subr.bf16.mxu1 %v2221_v20 }
 0x42f   : > { %2247 = vmatpush1.bf16.msra.mxu1 %v2220_v12  ;;  %v2368_v12 = vld [vmem:[%s5257_s15 + $0x148] sm:$0xff] }
 0x430   : > { %2248 = vmatprep.subr.bf16.mxu1 %v2219_v2  ;;  %v3516_v2 = vcombine.high %v2384_v33, %v2388_v10 }
 0x433   : > { %2249 = vmatpush1.bf16.msra.mxu1 %v2218_v6  ;;  %v3515_v6 = vcombine.low %v2384_v33, %v2388_v10  ;;  %v3537_v33 = vcombine.low %v2407_v46, %v2411_v31  ;;  %v2366_v46 = vld [vmem:[%s5257_s15 + $0x138] sm:$0xff] }
 0x434   : > { %2292 = vmatprep.subr.bf16.mxu1 %v2216_v42  ;;  %v2408_v42 = vld [vmem:[%s5257_s15 + $0x288] sm:$0xff] }
 0x435   : > { %v3539_v10 = vcombine.low %v2408_v42, %v2412_v37  ;;  %3124 = vmatpush2.bf16.msra.mxu0 %v3537_v33  ;;  %v2353_v33 = vld [vmem:[%s5257_s15 + $0xd0] sm:$0xff] }
 0x436   : > { %2267 = vmatmul.mubr.bf16.vlgmr.msra.gmra.mxu1 %v2217_v36  ;;  %v3540_v36 = vcombine.high %v2408_v42, %v2412_v37 }
 0x437   : > { %2293 = vmatpush1.bf16.msra.mxu1 %v2215_v58  ;;  %2310 = vmatprep.mubr.bf16.mxu1 %v5284_v51  ;;  %v2372_v51 = vld [vmem:[%s5257_s15 + $0x168] sm:$0xff]  ;;  %v2399_v58 = vld [vmem:[%s5257_s15 + $0x240] sm:$0xff] }
 0x438   : > { %3138 = vmatprep.subr.bf16.mxu1 %v3516_v2  ;;  %v3500_v20 = vcombine.high %v2368_v12, %v2372_v51  ;;  %v3499_v0 = vcombine.low %v2368_v12, %v2372_v51  ;;  %v2403_v2 = vld [vmem:[%s5257_s15 + $0x260] sm:$0xff] }
 0x439   : > { %v3530_v38 = vcombine.high %v2399_v58, %v2403_v2  ;;  %v2391_v51 = vld [vmem:[%s5257_s15 + $0x200] sm:$0xff] }
 0x43b   : > { %3125 = vmatprep.subr.bf16.mxu0 %v3530_v38 }
 0x43e   : > { %3456 = vmatmul.mubr.msk.bf16.vlgmr.msra.gmra.mxu1 %vm1379_vm1, %v2210_v43  ;;  %v2404_v43 = vld [vmem:[%s5257_s15 + $0x268] sm:$0xff] }
 0x43f   : > { %3139 = vmatpush1.bf16.msra.mxu1 %v3515_v6  ;;  %v3529_v6 = vcombine.low %v2399_v58, %v2403_v2  ;;  %v3532_v12 = vcombine.high %v2400_v29, %v2404_v43  ;;  %v2358_v58 = vld [vmem:[%s5257_s15 + $0xf8] sm:$0xff] }
 0x440   : > { %3140 = vmatprep.subr.bf16.mxu1 %v3508_v40  ;;  %v3531_v40 = vcombine.low %v2400_v29, %v2404_v43 }
 0x441   : > { %3126 = vmatpush2.bf16.msra.mxu0 %v3529_v6  ;;  %v2345_v6 = vld [vmem:[%s5257_s15 + $0x90] sm:$0xff] }
 0x443   : > { %3141 = vmatpush1.bf16.msra.mxu1 %v3507_v44  ;;  %v2395_v44 = vld [vmem:[%s5257_s15 + $0x220] sm:$0xff] }
 0x444   : > { %3142 = vmatprep.subr.bf16.mxu1 %v3500_v20  ;;  %v2392_v20 = vld [vmem:[%s5257_s15 + $0x208] sm:$0xff]  ;;  %v3522_v27 = vcombine.high %v2391_v51, %v2395_v44 }
 0x445   : > { %v3524_v24 = vcombine.high %v2392_v20, %v2396_v62 }
 0x446   : > { %3127 = vmatprep.subr.bf16.mxu0 %v3522_v27 }
 0x447   : > { %3143 = vmatpush1.bf16.msra.mxu1 %v3499_v0  ;;  %v3521_v0 = vcombine.low %v2391_v51, %v2395_v44  ;;  %v2350_v51 = vld [vmem:[%s5257_s15 + $0xb8] sm:$0xff] }
 0x448   : > { %3144 = vmatprep.subr.bf16.mxu1 %v3492_v22  ;;  %v3523_v22 = vcombine.low %v2392_v20, %v2396_v62 }
 0x449   : > { %3128 = vmatpush2.bf16.msra.mxu0 %v3521_v0  ;;  %v2337_v0 = vld [vmem:[%s5257_s15 + $0x50] sm:$0xff] }
 0x44b   : > { %3145 = vmatpush1.bf16.msra.mxu1 %v3491_v35  ;;  %v2389_v35 = vld [vmem:[%s5257_s15 + $0x1f0] sm:$0xff] }
 0x44c   : > { %3146 = vmatprep.subr.bf16.mxu1 %v3484_v14  ;;  %v2386_v14 = vld [vmem:[%s5257_s15 + $0x1d8] sm:$0xff]  ;;  %v3518_v8 = vcombine.high %v2385_v18, %v2389_v35 }
 0x44d   : > { %v3520_v17 = vcombine.high %v2386_v14, %v2390_v49 }
 0x44e   : > { %3179 = vmatprep.subr.bf16.mxu0 %v3518_v8 }
 0x44f   : > { %3147 = vmatpush1.bf16.msra.mxu1 %v3483_v11  ;;  %v3517_v11 = vcombine.low %v2385_v18, %v2389_v35  ;;  %v2342_v18 = vld [vmem:[%s5257_s15 + $0x78] sm:$0xff] }
 0x450   : > { %3148 = vmatprep.subr.bf16.mxu1 %v3476_v52  ;;  %v3519_v52 = vcombine.low %v2386_v14, %v2390_v49 }
 0x453   : > { %3149 = vmatpush1.bf16.msra.mxu1 %v3475_v57 }
 0x454   : > { %3150 = vmatprep.subr.bf16.mxu1 %v3468_v26 }
 0x457   : > { %3151 = vmatpush1.bf16.msra.mxu1 %v3467_v1 }
 0x458   : > { %3152 = vmatprep.subr.bf16.mxu1 %v3460_v54 }
 0x45b   : > { %3153 = vmatpush1.bf16.msra.mxu1 %v3459_v61 }
 0x45c   : > { %3154 = vmatprep.subr.bf16.mxu1 %v3580_v41 }
 0x45f   : > { %3155 = vmatpush2.bf16.msra.mxu1 %v3579_v60 }
 0x460   : > { %3156 = vmatprep.subr.bf16.mxu1 %v3572_v53  ;;  %v2381_v53 = vld [vmem:[%s5257_s15 + $0x1b0] sm:$0xff] }
 0x461   : > { %v3510_v7 = vcombine.high %v2377_v63, %v2381_v53  ;;  %v3509_v23 = vcombine.low %v2377_v63, %v2381_v53  ;;  %v2445_v53 = vld [vmem:[%s5257_s15 + $0x3b0] sm:$0xff] }
 0x463   : > { %3157 = vmatpush2.bf16.msra.mxu1 %v3571_v45 }
 0x464   : > { %3158 = vmatprep.subr.bf16.mxu1 %v3564_v32 }
 0x467   : > { %3159 = vmatpush2.bf16.msra.mxu1 %v3563_v19  ;;  %v3512_v19 = vcombine.high %v2378_v30, %v2382_v21  ;;  %v2442_v30 = vld [vmem:[%s5257_s15 + $0x398] sm:$0xff] }
 0x468   : > { %3160 = vmatprep.subr.bf16.mxu1 %v3556_v47  ;;  %v2373_v47 = vld [vmem:[%s5257_s15 + $0x170] sm:$0xff]  ;;  %v2446_v21 = vld [vmem:[%s5257_s15 + $0x3b8] sm:$0xff] }
 0x469   : > { %v3502_v25 = vcombine.high %v2369_v39, %v2373_v47  ;;  %v3501_v31 = vcombine.low %v2369_v39, %v2373_v47  ;;  %v2433_v47 = vld [vmem:[%s5257_s15 + $0x350] sm:$0xff] }
 0x46b   : > { %3161 = vmatpush2.bf16.msra.mxu1 %v3555_v56  ;;  %v2370_v56 = vld [vmem:[%s5257_s15 + $0x158] sm:$0xff] }
 0x46c   : > { %3162 = vmatprep.subr.bf16.mxu1 %v3548_v13  ;;  %v3504_v9 = vcombine.high %v2370_v56, %v2374_v34  ;;  %v2362_v13 = vld [vmem:[%s5257_s15 + $0x118] sm:$0xff]  ;;  %v3503_v42 = vcombine.low %v2370_v56, %v2374_v34  ;;  %v2437_v56 = vld [vmem:[%s5257_s15 + $0x370] sm:$0xff] }
 0x46d   : > { %v3496_v37 = vcombine.high %v2362_v13, %v2366_v46  ;;  %v3495_v29 = vcombine.low %v2362_v13, %v2366_v46  ;;  %v2434_v34 = vld [vmem:[%s5257_s15 + $0x358] sm:$0xff]  ;;  %v2429_v13 = vld [vmem:[%s5257_s15 + $0x330] sm:$0xff] }
 0x46e   : > { %v2426_v46 = vld [vmem:[%s5257_s15 + $0x318] sm:$0xff] }
 0x46f   : > { %3163 = vmatpush2.bf16.msra.mxu1 %v3547_v5  ;;  %v2365_v5 = vld [vmem:[%s5257_s15 + $0x130] sm:$0xff] }
 0x470   : > { %3164 = vmatprep.subr.bf16.mxu1 %v3540_v36  ;;  %v3494_v16 = vcombine.high %v2361_v3, %v2365_v5  ;;  %v2354_v36 = vld [vmem:[%s5257_s15 + $0xd8] sm:$0xff]  ;;  %v3493_v2 = vcombine.low %v2361_v3, %v2365_v5  ;;  %v2425_v5 = vld [vmem:[%s5257_s15 + $0x310] sm:$0xff] }
 0x471   : > { %v3488_v43 = vcombine.high %v2354_v36, %v2358_v58  ;;  %v3487_v20 = vcombine.low %v2354_v36, %v2358_v58  ;;  %v2421_v36 = vld [vmem:[%s5257_s15 + $0x2f0] sm:$0xff]  ;;  %v2418_v58 = vld [vmem:[%s5257_s15 + $0x2d8] sm:$0xff] }
 0x473   : > { %3165 = vmatpush2.bf16.msra.mxu1 %v3539_v10  ;;  %v2357_v10 = vld [vmem:[%s5257_s15 + $0xf0] sm:$0xff] }
 0x474   : > { %3166 = vmatprep.subr.bf16.mxu1 %v3532_v12  ;;  %v3486_v38 = vcombine.high %v2353_v33, %v2357_v10  ;;  %v2346_v12 = vld [vmem:[%s5257_s15 + $0x98] sm:$0xff]  ;;  %v3485_v44 = vcombine.low %v2353_v33, %v2357_v10  ;;  %v2417_v10 = vld [vmem:[%s5257_s15 + $0x2d0] sm:$0xff] }
 0x475   : > { %v3480_v62 = vcombine.high %v2346_v12, %v2350_v51  ;;  %v3479_v14 = vcombine.low %v2346_v12, %v2350_v51  ;;  %v2413_v12 = vld [vmem:[%s5257_s15 + $0x2b0] sm:$0xff]  ;;  %v2410_v51 = vld [vmem:[%s5257_s15 + $0x298] sm:$0xff] }
 0x477   : > { %3167 = vmatpush2.bf16.msra.mxu1 %v3531_v40  ;;  %v2349_v40 = vld [vmem:[%s5257_s15 + $0xb0] sm:$0xff] }
 0x478   : > { %3168 = vmatprep.subr.bf16.mxu1 %v3524_v24  ;;  %v3478_v27 = vcombine.high %v2345_v6, %v2349_v40  ;;  %v2338_v24 = vld [vmem:[%s5257_s15 + $0x58] sm:$0xff]  ;;  %v3477_v35 = vcombine.low %v2345_v6, %v2349_v40  ;;  %v2409_v40 = vld [vmem:[%s5257_s15 + $0x290] sm:$0xff] }
 0x479   : > { %v3472_v49 = vcombine.high %v2338_v24, %v2342_v18 }
 0x47b   : > { %3169 = vmatpush2.bf16.msra.mxu1 %v3523_v22  ;;  %v2341_v22 = vld [vmem:[%s5257_s15 + $0x70] sm:$0xff] }
 0x47c   : > { %3220 = vmatprep.subr.bf16.mxu1 %v3520_v17  ;;  %v3470_v8 = vcombine.high %v2337_v0, %v2341_v22  ;;  %v2330_v17 = vld [vmem:[%s5257_s15 + $0x18] sm:$0xff] }
 0x4f6   : > { %v2268_v50 = vpop.f32.mrf.mxu1 }
 0x4f8   : > { %v2270_v57 = vpop.f32.mrf.mxu1 }
 0x4fa   : > { %v2272_v26 = vpop.f32.mrf.mxu1 }
 0x4fb   : > { %v3471_v26 = vcombine.low %v2338_v24, %v2342_v18  ;;  %v2405_v24 = vld [vmem:[%s5257_s15 + $0x270] sm:$0xff]  ;;  %v2402_v18 = vld [vmem:[%s5257_s15 + $0x258] sm:$0xff] }
 0x4fc   : > { %v2273_v28 = vpop.f32.mrf.mxu1 }
 0x4fe   : > { %v2312_v15 = vpop.f32.mrf.mxu1 }
 0x4ff   : > { %v2313_v1 = vadd.f32 %v2312_v15, %v2268_v50  ;;  %v2334_v50 = vld [vmem:[%s5257_s15 + $0x38] sm:$0xff] }
 0x500   : > { %v2314_v54 = vpop.f32.mrf.mxu1  ;;  %v3464_v15 = vcombine.high %v2330_v17, %v2334_v50 }
 0x501   : > { %v2315_v55 = vadd.f32 %v2314_v54, %v2270_v57  ;;  %v2325_v61 = vadd.f32 %v2323_v4, %v2313_v1  ;;  %v3469_v57 = vcombine.low %v2337_v0, %v2341_v22  ;;  %v2449_v1 = vld [vmem:[%s5257_s15 + $0x3d0] sm:$0xff] }
 0x502   : > { %v2316_v41 = vpop.f32.mrf.mxu1  ;;  %v2453_v54 = vld [vmem:[%s5257_s15 + $0x3f0] sm:$0xff] }
 0x503   : > { %v2326_v48 = vadd.f32 %v2323_v4, %v2315_v55  ;;  %v5061_v32 = vpack.c.bf16 %v2325_v61, %v2325_v61  ;;  %v2450_v4 = vld [vmem:[%s5257_s15 + $0x3d8] sm:$0xff]  ;;  %v3463_v41 = vcombine.low %v2330_v17, %v2334_v50  ;;  %v2401_v22 = vld [vmem:[%s5257_s15 + $0x250] sm:$0xff] }
 0x504   : > { %v2317_v60 = vpop.f32.mrf.mxu1  ;;  %v2454_v55 = vld [vmem:[%s5257_s15 + $0x3f8] sm:$0xff]  ;;  %v2397_v17 = vld [vmem:[%s5257_s15 + $0x230] sm:$0xff] }
 0x505   : > { %v2456_v45 = vpack.c.bf16 %v2326_v48, %v2326_v48  ;;  %v3582_v48 = vcombine.high %v2449_v1, %v2453_v54  ;;  %v3584_v63 = vcombine.high %v2450_v4, %v2454_v55  ;;  %v2441_v60 = vld [vmem:[%s5257_s15 + $0x390] sm:$0xff]  ;;  %v3583_v39 = vcombine.low %v2450_v4, %v2454_v55  ;;  %v2394_v50 = vld [vmem:[%s5257_s15 + $0x218] sm:$0xff] }
 0x507   : > { %3129 = vmatprep.mubr.bf16.mxu0 %v2456_v45  ;;  %3170 = vmatprep.mubr.bf16.mxu1 %v2456_v45 }
 0x508   : > { %3130 = vmatmul.mubr.bf16.vlgmr.msra.gmra.mxu0 %v5061_v32  ;;  %3171 = vmatmul.mubr.bf16.vlgmr.msra.gmra.mxu1 %v5061_v32 }
 0x509   : > { %3180 = vmatpush1.bf16.msra.mxu0 %v3517_v11  ;;  %3221 = vmatpush1.bf16.msra.mxu1 %v3519_v52  ;;  %v2329_v11 = vld [vmem:[%s5257_s15 + $0x10] sm:$0xff] }
 0x50a   : > { %3211 = vmatprep.mubr.bf16.mxu0 %v2456_v45  ;;  %3252 = vmatprep.mubr.bf16.mxu1 %v2456_v45  ;;  %v2333_v52 = vld [vmem:[%s5257_s15 + $0x30] sm:$0xff]  ;;  %v3581_v45 = vcombine.low %v2449_v1, %v2453_v54 }
 0x50b   : > { %3181 = vmatprep.subr.bf16.mxu0 %v3510_v7  ;;  %3222 = vmatprep.subr.bf16.mxu1 %v3512_v19  ;;  %v3462_v28 = vcombine.high %v2329_v11, %v2333_v52  ;;  %v3461_v61 = vcombine.low %v2329_v11, %v2333_v52  ;;  %v3574_v7 = vcombine.high %v2441_v60, %v2445_v53  ;;  %v2393_v52 = vld [vmem:[%s5257_s15 + $0x210] sm:$0xff] }
 0x50c   : > { %v3576_v19 = vcombine.high %v2442_v30, %v2446_v21  ;;  %v3525_v54 = vcombine.low %v2393_v52, %v2397_v17 }
 0x50d   : > { %3182 = vmatpush1.bf16.msra.mxu0 %v3509_v23  ;;  %3223 = vmatpush1.bf16.msra.mxu1 %v3511_v59  ;;  %v2438_v23 = vld [vmem:[%s5257_s15 + $0x378] sm:$0xff]  ;;  %v3573_v59 = vcombine.low %v2441_v60, %v2445_v53 }
 0x50e   : > { %3183 = vmatprep.subr.bf16.mxu0 %v3502_v25  ;;  %3224 = vmatprep.subr.bf16.mxu1 %v3504_v9  ;;  %v3575_v25 = vcombine.low %v2442_v30, %v2446_v21  ;;  %v3566_v9 = vcombine.high %v2433_v47, %v2437_v56  ;;  %v3568_v3 = vcombine.high %v2434_v34, %v2438_v23 }
 0x511   : > { %3184 = vmatpush1.bf16.msra.mxu0 %v3501_v31  ;;  %3225 = vmatpush1.bf16.msra.mxu1 %v3503_v42  ;;  %v2430_v31 = vld [vmem:[%s5257_s15 + $0x338] sm:$0xff]  ;;  %v3565_v42 = vcombine.low %v2433_v47, %v2437_v56 }
 0x512   : > { %3185 = vmatprep.subr.bf16.mxu0 %v3494_v16  ;;  %3226 = vmatprep.subr.bf16.mxu1 %v3496_v37  ;;  %v3567_v16 = vcombine.low %v2434_v34, %v2438_v23  ;;  %v3558_v37 = vcombine.high %v2425_v5, %v2429_v13  ;;  %v3560_v33 = vcombine.high %v2426_v46, %v2430_v31 }
 0x515   : > { %3186 = vmatpush1.bf16.msra.mxu0 %v3493_v2  ;;  %3227 = vmatpush1.bf16.msra.mxu1 %v3495_v29  ;;  %v2422_v2 = vld [vmem:[%s5257_s15 + $0x2f8] sm:$0xff]  ;;  %v3557_v29 = vcombine.low %v2425_v5, %v2429_v13 }
 0x516   : > { %3187 = vmatprep.subr.bf16.mxu0 %v3486_v38  ;;  %3228 = vmatprep.subr.bf16.mxu1 %v3488_v43  ;;  %v3559_v38 = vcombine.low %v2426_v46, %v2430_v31  ;;  %v3550_v43 = vcombine.high %v2417_v10, %v2421_v36  ;;  %v3552_v6 = vcombine.high %v2418_v58, %v2422_v2 }
 0x519   : > { %3188 = vmatpush1.bf16.msra.mxu0 %v3485_v44  ;;  %3229 = vmatpush1.bf16.msra.mxu1 %v3487_v20  ;;  %v2414_v44 = vld [vmem:[%s5257_s15 + $0x2b8] sm:$0xff]  ;;  %v3549_v20 = vcombine.low %v2417_v10, %v2421_v36 }
 0x51a   : > { %3189 = vmatprep.subr.bf16.mxu0 %v3478_v27  ;;  %3230 = vmatprep.subr.bf16.mxu1 %v3480_v62  ;;  %v3551_v27 = vcombine.low %v2418_v58, %v2422_v2  ;;  %v3542_v62 = vcombine.high %v2409_v40, %v2413_v12  ;;  %v3544_v0 = vcombine.high %v2410_v51, %v2414_v44 }
 0x51d   : > { %3190 = vmatpush1.bf16.msra.mxu0 %v3477_v35  ;;  %3231 = vmatpush1.bf16.msra.mxu1 %v3479_v14  ;;  %v2406_v35 = vld [vmem:[%s5257_s15 + $0x278] sm:$0xff]  ;;  %v3541_v14 = vcombine.low %v2409_v40, %v2413_v12 }
 0x51e   : > { %3191 = vmatprep.subr.bf16.mxu0 %v3470_v8  ;;  %3232 = vmatprep.subr.bf16.mxu1 %v3472_v49  ;;  %v3543_v8 = vcombine.low %v2410_v51, %v2414_v44  ;;  %v3534_v49 = vcombine.high %v2401_v22, %v2405_v24  ;;  %v3536_v11 = vcombine.high %v2402_v18, %v2406_v35 }
 0x521   : > { %3192 = vmatpush1.bf16.msra.mxu0 %v3469_v57  ;;  %3233 = vmatpush1.bf16.msra.mxu1 %v3471_v26  ;;  %v2398_v57 = vld [vmem:[%s5257_s15 + $0x238] sm:$0xff]  ;;  %v3533_v26 = vcombine.low %v2401_v22, %v2405_v24 }
 0x522   : > { %3193 = vmatprep.subr.bf16.mxu0 %v3462_v28  ;;  %3234 = vmatprep.subr.bf16.mxu1 %v3464_v15  ;;  %v3535_v28 = vcombine.low %v2402_v18, %v2406_v35  ;;  %v3526_v15 = vcombine.high %v2393_v52, %v2397_v17  ;;  %v3528_v1 = vcombine.high %v2394_v50, %v2398_v57 }
 0x523   : > { %v3527_v4 = vcombine.low %v2394_v50, %v2398_v57 }
 0x525   : > { %3194 = vmatpush1.bf16.msra.mxu0 %v3461_v61  ;;  %3235 = vmatpush1.bf16.msra.mxu1 %v3463_v41 }
 0x526   : > { %3195 = vmatprep.subr.bf16.mxu0 %v3582_v48  ;;  %3236 = vmatprep.subr.bf16.mxu1 %v3584_v63 }
 0x529   : > { %3196 = vmatpush2.bf16.msra.mxu0 %v3581_v45  ;;  %3237 = vmatpush2.bf16.msra.mxu1 %v3583_v39 }
 0x52a   : > { %3197 = vmatprep.subr.bf16.mxu0 %v3574_v7  ;;  %3238 = vmatprep.subr.bf16.mxu1 %v3576_v19 }
 0x52d   : > { %3198 = vmatpush2.bf16.msra.mxu0 %v3573_v59  ;;  %3239 = vmatpush2.bf16.msra.mxu1 %v3575_v25 }
 0x52e   : > { %3199 = vmatprep.subr.bf16.mxu0 %v3566_v9  ;;  %3240 = vmatprep.subr.bf16.mxu1 %v3568_v3 }
 0x531   : > { %3200 = vmatpush2.bf16.msra.mxu0 %v3565_v42  ;;  %3241 = vmatpush2.bf16.msra.mxu1 %v3567_v16 }
 0x532   : > { %3201 = vmatprep.subr.bf16.mxu0 %v3558_v37  ;;  %3242 = vmatprep.subr.bf16.mxu1 %v3560_v33 }
 0x535   : > { %3202 = vmatpush2.bf16.msra.mxu0 %v3557_v29  ;;  %3243 = vmatpush2.bf16.msra.mxu1 %v3559_v38 }
 0x536   : > { %3203 = vmatprep.subr.bf16.mxu0 %v3550_v43  ;;  %3244 = vmatprep.subr.bf16.mxu1 %v3552_v6 }
 0x539   : > { %3204 = vmatpush2.bf16.msra.mxu0 %v3549_v20  ;;  %3245 = vmatpush2.bf16.msra.mxu1 %v3551_v27 }
 0x53a   : > { %3205 = vmatprep.subr.bf16.mxu0 %v3542_v62  ;;  %3246 = vmatprep.subr.bf16.mxu1 %v3544_v0 }
 0x53d   : > { %3206 = vmatpush2.bf16.msra.mxu0 %v3541_v14  ;;  %3247 = vmatpush2.bf16.msra.mxu1 %v3543_v8 }
 0x53e   : > { %3207 = vmatprep.subr.bf16.mxu0 %v3534_v49  ;;  %3248 = vmatprep.subr.bf16.mxu1 %v3536_v11 }
 0x541   : > { %3208 = vmatpush2.bf16.msra.mxu0 %v3533_v26  ;;  %3249 = vmatpush2.bf16.msra.mxu1 %v3535_v28 }
 0x542   : > { %3209 = vmatprep.subr.bf16.mxu0 %v3526_v15  ;;  %3250 = vmatprep.subr.bf16.mxu1 %v3528_v1 }
 0x545   : > { %3210 = vmatpush2.bf16.msra.mxu0 %v3525_v54  ;;  %3251 = vmatpush2.bf16.msra.mxu1 %v3527_v4 }
 0x548   : > { %3212 = vmatmul.mubr.bf16.vlgmr.msra.gmra.mxu0 %v5061_v32  ;;  %3253 = vmatmul.mubr.bf16.vlgmr.msra.gmra.mxu1 %v5061_v32 }
 0x5c8   : > { %v3131_v55 = vpop.f32.mrf.mxu0  ;;  %v3172_v61 = vpop.f32.mrf.mxu1 }
 0x5c9   : > { %3261 = vst [vmem:[%s561_s18] sm:$0xff] %v3131_v55  ;;  %3263 = vst [vmem:[%s561_s18 + $0x10] sm:$0xff] %v3172_v61 }
 0x5ca   : > { %v3133_v41 = vpop.f32.mrf.mxu0  ;;  %v3174_v48 = vpop.f32.mrf.mxu1 }
 0x5cb   : > { %3262 = vst [vmem:[%s561_s18 + $0x8] sm:$0xff] %v3133_v41  ;;  %3264 = vst [vmem:[%s561_s18 + $0x18] sm:$0xff] %v3174_v48 }
 0x5cc   : > { %v3135_v63 = vpop.f32.mrf.mxu0  ;;  %v3176_v60 = vpop.f32.mrf.mxu1 }
 0x5ce   : > { %v3136_v53 = vpop.f32.mrf.mxu0  ;;  %v3177_v30 = vpop.f32.mrf.mxu1 }
 0x608   : > { %v3213_v21 = vpop.f32.mrf.mxu0  ;;  %v3254_v45 = vpop.f32.mrf.mxu1 }
 0x609   : > { %3265 = vst [vmem:[%s561_s18 + $0x20] sm:$0xff] %v3213_v21  ;;  %3267 = vst [vmem:[%s561_s18 + $0x30] sm:$0xff] %v3254_v45 }
 0x60a   : > { %v3215_v32 = vpop.f32.mrf.mxu0  ;;  %v3256_v39 = vpop.f32.mrf.mxu1 }
 0x60b   : > { %3266 = vst [vmem:[%s561_s18 + $0x28] sm:$0xff] %v3215_v32  ;;  %3268 = vst [vmem:[%s561_s18 + $0x38] sm:$0xff] %v3256_v39 }
 0x60c   : > { %v3217_v7 = vpop.f32.mrf.mxu0  ;;  %v3258_v19 = vpop.f32.mrf.mxu1 }
 0x60e   : > { %v3218_v47 = vpop.f32.mrf.mxu0  ;;  %v3259_v56 = vpop.f32.mrf.mxu1 }
 0x60f PF: > { %s26_s21 = sadd.s32 1, %s3965_s21  }
 0x610   : > { %p23_p4 = scmp.ge.s32.totalorder %s26_s21, 4  }
 0x612   :  { %25 = sbr.rel (!%p23_p4) target bundleno = 2 (0x2), region = 120 }

</bundles_post_ra>
